<compile_context>
chip_gen: v5e
topology: v5e:2x2
jax: 0.10.0
libtpu: 0.0.40
codegen_flags: <defaults>
</compile_context>

<pallas_src>
import functools

import jax
import jax.numpy as jnp
import numpy as np
from jax.experimental import pallas as pl
from jax.experimental.pallas import tpu as pltpu


def _resblock_ba_kernel(x_ref, w1_ref, b1_ref, w2_ref, b2_ref,
                        wd_ref, bd_ref, wu_ref, bu_ref, mask_ref,
                        out_ref, *, width, res_scale):
    """One batch element per grid step.

    x_ref   : (1, C, HW)   input image, channels on sublanes, pixels on lanes
    w1/w2   : (3C, 3C)     kx-grouped conv weights (bf16):
                           row = kx*C + cout, col = ky*C + cin
    b1/b2   : (C, 1)       f32 biases
    wd/bd   : (Cr, C), (Cr, 1)  attention squeeze (transposed, f32)
    wu/bu   : (C, Cr), (C, 1)   attention excite  (transposed, f32)
    mask_ref: (4, HW)      f32 border-validity masks [dy-1, dy+1, dx-1, dx+1]
    out_ref : (1, C, HW)
    """
    C = x_ref.shape[1]
    HW = x_ref.shape[2]
    W = width

    x = x_ref[0].astype(jnp.float32)                        # (C, HW)
    masks = mask_ref[...]                                    # (4, HW) f32
    v_up = masks[0:1, :] > 0.5     # valid for the dy=-1 shifted copy
    v_dn = masks[1:2, :] > 0.5     # valid for the dy=+1 shifted copy
    v_lf = masks[2:3, :] > 0.5     # valid for the dx=-1 tap result
    v_rt = masks[3:4, :] > 0.5     # valid for the dx=+1 tap result

    def conv3x3(inp, w_all, bias_col):
        # Vertical im2col: X3 = [shift(dy=-1); center; shift(dy=+1)] -> (3C,HW).
        up = jnp.where(v_up, pltpu.roll(inp, shift=W, axis=1), 0.0)
        dn = jnp.where(v_dn, pltpu.roll(inp, shift=(HW - W) % HW, axis=1), 0.0)
        x3 = jnp.concatenate([up, inp, dn], axis=0).astype(jnp.bfloat16)
        # Single wide MXU pass, K = 3C, bf16 operands, f32 accumulation.
        y = jnp.dot(w_all, x3, preferred_element_type=jnp.float32)  # (3C, HW)
        # kx blocks of the result: rows [0:C]=dx-1, [C:2C]=dx 0, [2C:3C]=dx+1.
        left = jnp.where(v_lf, pltpu.roll(y[0:C, :], shift=1, axis=1), 0.0)
        right = jnp.where(v_rt,
                          pltpu.roll(y[2 * C:3 * C, :], shift=(HW - 1) % HW,
                                     axis=1), 0.0)
        # Tree combine (short dependence chain): (left+right) + (center+bias).
        return (left + right) + (y[C:2 * C, :] + bias_col)

    # ---- body: conv1 + ReLU, conv2 ----
    h1 = jnp.maximum(conv3x3(x, w1_ref[...], b1_ref[...]), 0.0)
    body = conv3x3(h1, w2_ref[...], b2_ref[...])             # (C, HW) f32

    # ---- BlancedAttention: shared-MLP channel attention over avg+max pool ----
    avg = jnp.sum(body, axis=1, keepdims=True) * jnp.float32(1.0 / HW)  # (C,1)
    mx = jnp.max(body, axis=1, keepdims=True)                            # (C,1)
    col = jax.lax.broadcasted_iota(jnp.int32, (C, 2), 1)
    d = jnp.where(col == 0, avg, mx)                                     # (C,2)

    h = jnp.maximum(
        jnp.dot(wd_ref[...], d, preferred_element_type=jnp.float32)
        + bd_ref[...], 0.0)                                              # (Cr,2)
    z = (jnp.dot(wu_ref[...], h, preferred_element_type=jnp.float32)
         + bu_ref[...])                                                  # (C,2)
    # Fold res_scale into the (C,1) attention column (cheap, column-sized).
    ca = jax.nn.sigmoid(jnp.sum(z, axis=1, keepdims=True)) * res_scale   # (C,1)

    # ---- residual:  attention(body(x)) * res_scale + x ----
    out_ref[0] = (body * ca + x).astype(out_ref.dtype)


def resblock_balanced_attention(x_nchw, params, res_scale=1.0):
    w1, b1, w2, b2, wd, bd, wu, bu = params                  # original layouts
    B, C, H, W = x_nchw.shape
    Cr = wd.shape[1]
    HW = H * W                     # lane-dense when HW % 128 == 0 (true here)

    # Free reshape: NCHW is already contiguous as (B, C, H*W).
    x2 = x_nchw.reshape(B, C, HW)

    # Conv weights (9, Cin, Cout), tap t = ky*3+kx, -> kx-grouped (3C, 3C):
    #   row = kx*C + cout, col = ky*C + cin.  Cast to bf16 for the MXU.
    def to_kx_grouped(w):
        w9 = w.reshape(3, 3, C, C)                 # (ky, kx, cin, cout)
        w9 = jnp.transpose(w9, (1, 3, 0, 2))       # (kx, cout, ky, cin)
        return w9.reshape(3 * C, 3 * C).astype(jnp.bfloat16)

    w1w, w2w = to_kx_grouped(w1), to_kx_grouped(w2)
    b1c = b1.reshape(C, 1).astype(jnp.float32)
    b2c = b2.reshape(C, 1).astype(jnp.float32)
    wdt = wd.T.astype(jnp.float32)                 # (Cr, C)
    wut = wu.T.astype(jnp.float32)                 # (C, Cr)
    bdc = bd.reshape(Cr, 1).astype(jnp.float32)
    buc = bu.reshape(C, 1).astype(jnp.float32)

    # Host-side numpy border masks (static in H, W): (4, HW) float32.
    #   row 0: dy=-1 shifted copy valid (y-1 >= 0)
    #   row 1: dy=+1 shifted copy valid (y+1 <  H)
    #   row 2: dx=-1 tap result  valid (x-1 >= 0)
    #   row 3: dx=+1 tap result  valid (x+1 <  W)
    ys = np.arange(H)[:, None]
    xs = np.arange(W)[None, :]
    masks_np = np.stack([
        np.broadcast_to(ys - 1 >= 0, (H, W)),
        np.broadcast_to(ys + 1 < H, (H, W)),
        np.broadcast_to(xs - 1 >= 0, (H, W)),
        np.broadcast_to(xs + 1 < W, (H, W)),
    ], axis=0).reshape(4, HW).astype(np.float32)
    masks = jnp.asarray(masks_np)

    # VMEM budget: resident weights/masks + double-buffered I/O blocks + staged
    # intermediates (X3/Y (3C,HW), h1/body/acc (C,HW), bf16 copies).
    itemsize = jnp.dtype(x_nchw.dtype).itemsize
    est = (2 * (3 * C) * (3 * C) * 2                      # bf16 conv weights
           + (2 * Cr * C + 2 * C + Cr) * 4                # attention params
           + 4 * HW * 4                                   # masks
           + 4 * C * HW * itemsize                        # 2x double-buffered I/O
           + 14 * C * HW * 4)                             # f32/bf16 intermediates
    try:
        phys = pltpu.get_tpu_info().vmem_capacity_bytes
    except Exception:                                     # pragma: no cover
        phys = 64 * 2**20
    vmem_limit = int(min(max(2 * est, 32 * 2**20), int(0.75 * phys)))
    # Never clamp below the footprint estimate (avoid compile-time VMEM OOM).
    vmem_limit = int(max(vmem_limit, min(int(1.25 * est), phys)))

    # Advisory cost estimate: 2 convs of 2*(3C)*(3C)*HW flops each per image.
    flops = int(B * (2 * 2 * (3 * C) * (3 * C) * HW + 2 * 2 * Cr * C * 2))
    bytes_accessed = int(2 * B * C * HW * itemsize
                         + 2 * (3 * C) * (3 * C) * 2 + 4 * HW * 4)
    cost = pl.CostEstimate(flops=flops, transcendentals=int(2 * B * C),
                           bytes_accessed=bytes_accessed)

    kernel = functools.partial(_resblock_ba_kernel, width=W,
                               res_scale=float(res_scale))
    out2 = pl.pallas_call(
        kernel,
        out_shape=jax.ShapeDtypeStruct((B, C, HW), x_nchw.dtype),
        grid_spec=pltpu.PrefetchScalarGridSpec(
            num_scalar_prefetch=0,
            grid=(B,),
            in_specs=[
                pl.BlockSpec((1, C, HW), lambda b: (b, 0, 0)),
                pl.BlockSpec((3 * C, 3 * C), lambda b: (0, 0)),
                pl.BlockSpec((C, 1), lambda b: (0, 0)),
                pl.BlockSpec((3 * C, 3 * C), lambda b: (0, 0)),
                pl.BlockSpec((C, 1), lambda b: (0, 0)),
                pl.BlockSpec((Cr, C), lambda b: (0, 0)),
                pl.BlockSpec((Cr, 1), lambda b: (0, 0)),
                pl.BlockSpec((C, Cr), lambda b: (0, 0)),
                pl.BlockSpec((C, 1), lambda b: (0, 0)),
                pl.BlockSpec((4, HW), lambda b: (0, 0)),
            ],
            out_specs=pl.BlockSpec((1, C, HW), lambda b: (b, 0, 0)),
        ),
        compiler_params=pltpu.CompilerParams(
            dimension_semantics=("parallel",),
            vmem_limit_bytes=vmem_limit),
        cost_estimate=cost,
    )(x2, w1w, b1c, w2w, b2c, wdt, bdc, wut, buc, masks)

    return out2.reshape(B, C, H, W)


# -------------------- pure-JAX reference (for verification) --------------------
def ref_forward(x_nchw, params, res_scale=1.0):
    w1, b1, w2, b2, wd, bd, wu, bu = params
    C = x_nchw.shape[1]

    def to_oihw(wk):                           # (9, Cin, Cout) -> (Cout, Cin, 3, 3)
        w = wk.reshape(3, 3, C, C)
        return jnp.transpose(w, (3, 2, 0, 1))

    def conv3x3(x, wk, b):
        y = jax.lax.conv_general_dilated(
            x, to_oihw(wk), (1, 1), ((1, 1), (1, 1)),
            dimension_numbers=("NCHW", "OIHW", "NCHW"))
        return y + b.reshape(1, C, 1, 1)

    body = conv3x3(x_nchw, w1, b1)
    body = jnp.maximum(body, 0.0)
    body = conv3x3(body, w2, b2)

    avg = jnp.mean(body, axis=(2, 3))          # (B, C)
    mx = jnp.max(body, axis=(2, 3))            # (B, C)

    def mlp(v):
        h = jnp.maximum(v @ wd + bd, 0.0)
        return h @ wu + bu

    ca = jax.nn.sigmoid(mlp(avg) + mlp(mx))[:, :, None, None]
    return body * ca * res_scale + x_nchw


if __name__ == "__main__":
    B, C, H, W = 2, 32, 16, 16
    Cr = C // 4

    key = jax.random.PRNGKey(0)
    keys = jax.random.split(key, 9)
    s = 0.1
    w1 = s * jax.random.normal(keys[0], (9, C, C), jnp.float32)
    b1 = s * jax.random.normal(keys[1], (1, C), jnp.float32)
    w2 = s * jax.random.normal(keys[2], (9, C, C), jnp.float32)
    b2 = s * jax.random.normal(keys[3], (1, C), jnp.float32)
    wd = s * jax.random.normal(keys[4], (C, Cr), jnp.float32)
    bd = s * jax.random.normal(keys[5], (1, Cr), jnp.float32)
    wu = s * jax.random.normal(keys[6], (Cr, C), jnp.float32)
    bu = s * jax.random.normal(keys[7], (1, C), jnp.float32)
    x = jax.random.normal(keys[8], (B, C, H, W), jnp.float32)
    params = (w1, b1, w2, b2, wd, bd, wu, bu)

    out = resblock_balanced_attention(x, params, res_scale=1.0)
    out = jax.block_until_ready(out)

    ref = ref_forward(x, params, res_scale=1.0)
    # bf16 MXU operands (f32 accumulation) -> relaxed tolerance vs f32 reference.
    np.testing.assert_allclose(np.asarray(out), np.asarray(ref),
                               rtol=2e-2, atol=2e-2)
    print("KERNEL_OK")
</pallas_src>

<mosaic_0001>
module attributes {stable_mosaic.version = 11 : i64} {
  func.func @_resblock_ba_kernel(%arg0: i32, %arg1: memref<1x32x256xf32, #tpu.memory_space<vmem>>, %arg2: memref<96x96xbf16, #tpu.memory_space<vmem>>, %arg3: memref<32x1xf32, #tpu.memory_space<vmem>>, %arg4: memref<96x96xbf16, #tpu.memory_space<vmem>>, %arg5: memref<32x1xf32, #tpu.memory_space<vmem>>, %arg6: memref<8x32xf32, #tpu.memory_space<vmem>>, %arg7: memref<8x1xf32, #tpu.memory_space<vmem>>, %arg8: memref<32x8xf32, #tpu.memory_space<vmem>>, %arg9: memref<32x1xf32, #tpu.memory_space<vmem>>, %arg10: memref<4x256xf32, #tpu.memory_space<vmem>>, %arg11: memref<1x32x256xf32, #tpu.memory_space<vmem>>) attributes {dimension_semantics = [#tpu.dimension_semantics<parallel>], iteration_bounds = array<i64: 2>, scalar_prefetch = 0 : i64, scratch_operands = 0 : i64, tpu.core_type = #tpu.core_type<tc>, window_params = [{transform_indices = @transform_0, window_bounds = array<i64: 1, 32, 256>}, {pipeline_mode = #tpu.pipeline_mode<synchronous>, transform_indices = @transform_1, window_bounds = array<i64: 96, 96>}, {pipeline_mode = #tpu.pipeline_mode<synchronous>, transform_indices = @transform_2, window_bounds = array<i64: 32, 1>}, {pipeline_mode = #tpu.pipeline_mode<synchronous>, transform_indices = @transform_3, window_bounds = array<i64: 96, 96>}, {pipeline_mode = #tpu.pipeline_mode<synchronous>, transform_indices = @transform_4, window_bounds = array<i64: 32, 1>}, {pipeline_mode = #tpu.pipeline_mode<synchronous>, transform_indices = @transform_5, window_bounds = array<i64: 8, 32>}, {pipeline_mode = #tpu.pipeline_mode<synchronous>, transform_indices = @transform_6, window_bounds = array<i64: 8, 1>}, {pipeline_mode = #tpu.pipeline_mode<synchronous>, transform_indices = @transform_7, window_bounds = array<i64: 32, 8>}, {pipeline_mode = #tpu.pipeline_mode<synchronous>, transform_indices = @transform_8, window_bounds = array<i64: 32, 1>}, {pipeline_mode = #tpu.pipeline_mode<synchronous>, transform_indices = @transform_9, window_bounds = array<i64: 4, 256>}, {transform_indices = @transform_10, window_bounds = array<i64: 1, 32, 256>}]} {
    %c0 = arith.constant 0 : index
    %c0_0 = arith.constant 0 : index
    %c0_1 = arith.constant 0 : index
    %0 = vector.load %arg1[%c0, %c0_0, %c0_1] : memref<1x32x256xf32, #tpu.memory_space<vmem>>, vector<1x32x256xf32>
    %1 = vector.shape_cast %0 : vector<1x32x256xf32> to vector<32x256xf32>
    %c0_2 = arith.constant 0 : index
    %c0_3 = arith.constant 0 : index
    %2 = vector.load %arg10[%c0_2, %c0_3] : memref<4x256xf32, #tpu.memory_space<vmem>>, vector<4x256xf32>
    %3 = vector.extract_strided_slice %2 {offsets = [0, 0], sizes = [1, 256], strides = [1, 1]} : vector<4x256xf32> to vector<1x256xf32>
    %cst = arith.constant 5.000000e-01 : f32
    %4 = vector.broadcast %cst : f32 to vector<1x256xf32>
    %5 = arith.cmpf ogt, %3, %4 : vector<1x256xf32>
    %6 = vector.extract_strided_slice %2 {offsets = [1, 0], sizes = [1, 256], strides = [1, 1]} : vector<4x256xf32> to vector<1x256xf32>
    %cst_4 = arith.constant 5.000000e-01 : f32
    %7 = vector.broadcast %cst_4 : f32 to vector<1x256xf32>
    %8 = arith.cmpf ogt, %6, %7 : vector<1x256xf32>
    %9 = vector.extract_strided_slice %2 {offsets = [2, 0], sizes = [1, 256], strides = [1, 1]} : vector<4x256xf32> to vector<1x256xf32>
    %cst_5 = arith.constant 5.000000e-01 : f32
    %10 = vector.broadcast %cst_5 : f32 to vector<1x256xf32>
    %11 = arith.cmpf ogt, %9, %10 : vector<1x256xf32>
    %12 = vector.extract_strided_slice %2 {offsets = [3, 0], sizes = [1, 256], strides = [1, 1]} : vector<4x256xf32> to vector<1x256xf32>
    %cst_6 = arith.constant 5.000000e-01 : f32
    %13 = vector.broadcast %cst_6 : f32 to vector<1x256xf32>
    %14 = arith.cmpf ogt, %12, %13 : vector<1x256xf32>
    %c0_7 = arith.constant 0 : index
    %c0_8 = arith.constant 0 : index
    %15 = vector.load %arg2[%c0_7, %c0_8] : memref<96x96xbf16, #tpu.memory_space<vmem>>, vector<96x96xbf16>
    %c0_9 = arith.constant 0 : index
    %c0_10 = arith.constant 0 : index
    %16 = vector.load %arg3[%c0_9, %c0_10] : memref<32x1xf32, #tpu.memory_space<vmem>>, vector<32x1xf32>
    %c16_i32 = arith.constant 16 : i32
    %17 = tpu.dynamic_rotate %1 by %c16_i32 dim 1 : vector<32x256xf32>, i32 -> vector<32x256xf32>
    %cst_11 = arith.constant 0.000000e+00 : f32
    %18 = vector.shape_cast %5 : vector<1x256xi1> to vector<1x256xi1>
    %19 = vector.broadcast %18 : vector<1x256xi1> to vector<32x256xi1>
    %20 = vector.broadcast %cst_11 : f32 to vector<32x256xf32>
    %21 = arith.select %19, %17, %20 : vector<32x256xi1>, vector<32x256xf32>
    %c240_i32 = arith.constant 240 : i32
    %22 = tpu.dynamic_rotate %1 by %c240_i32 dim 1 : vector<32x256xf32>, i32 -> vector<32x256xf32>
    %cst_12 = arith.constant 0.000000e+00 : f32
    %23 = vector.shape_cast %8 : vector<1x256xi1> to vector<1x256xi1>
    %24 = vector.broadcast %23 : vector<1x256xi1> to vector<32x256xi1>
    %25 = vector.broadcast %cst_12 : f32 to vector<32x256xf32>
    %26 = arith.select %24, %22, %25 : vector<32x256xi1>, vector<32x256xf32>
    %27 = tpu.concatenate %21, %1, %26 in 0 : vector<32x256xf32>, vector<32x256xf32>, vector<32x256xf32> -> vector<96x256xf32>
    %28 = arith.truncf %27 : vector<96x256xf32> to vector<96x256xbf16>
    %cst_13 = arith.constant dense<0.000000e+00> : vector<96x256xf32>
    %29 = tpu.matmul %15, %28, %cst_13 {dimension_numbers = #tpu.dot_dimension_numbers<[1], [0], [0], [1], [0, 0, 1, 1], [], []>} : vector<96x96xbf16>, vector<96x256xbf16>, vector<96x256xf32> -> vector<96x256xf32>
    %30 = vector.extract_strided_slice %29 {offsets = [0, 0], sizes = [32, 256], strides = [1, 1]} : vector<96x256xf32> to vector<32x256xf32>
    %c1_i32 = arith.constant 1 : i32
    %31 = tpu.dynamic_rotate %30 by %c1_i32 dim 1 : vector<32x256xf32>, i32 -> vector<32x256xf32>
    %cst_14 = arith.constant 0.000000e+00 : f32
    %32 = vector.shape_cast %11 : vector<1x256xi1> to vector<1x256xi1>
    %33 = vector.broadcast %32 : vector<1x256xi1> to vector<32x256xi1>
    %34 = vector.broadcast %cst_14 : f32 to vector<32x256xf32>
    %35 = arith.select %33, %31, %34 : vector<32x256xi1>, vector<32x256xf32>
    %36 = vector.extract_strided_slice %29 {offsets = [64, 0], sizes = [32, 256], strides = [1, 1]} : vector<96x256xf32> to vector<32x256xf32>
    %c255_i32 = arith.constant 255 : i32
    %37 = tpu.dynamic_rotate %36 by %c255_i32 dim 1 : vector<32x256xf32>, i32 -> vector<32x256xf32>
    %cst_15 = arith.constant 0.000000e+00 : f32
    %38 = vector.shape_cast %14 : vector<1x256xi1> to vector<1x256xi1>
    %39 = vector.broadcast %38 : vector<1x256xi1> to vector<32x256xi1>
    %40 = vector.broadcast %cst_15 : f32 to vector<32x256xf32>
    %41 = arith.select %39, %37, %40 : vector<32x256xi1>, vector<32x256xf32>
    %42 = arith.addf %35, %41 : vector<32x256xf32>
    %43 = vector.extract_strided_slice %29 {offsets = [32, 0], sizes = [32, 256], strides = [1, 1]} : vector<96x256xf32> to vector<32x256xf32>
    %44 = vector.broadcast %16 : vector<32x1xf32> to vector<32x256xf32>
    %45 = arith.addf %43, %44 : vector<32x256xf32>
    %46 = arith.addf %42, %45 : vector<32x256xf32>
    %cst_16 = arith.constant 0.000000e+00 : f32
    %47 = vector.broadcast %cst_16 : f32 to vector<32x256xf32>
    %48 = arith.maximumf %46, %47 : vector<32x256xf32>
    %c0_17 = arith.constant 0 : index
    %c0_18 = arith.constant 0 : index
    %49 = vector.load %arg4[%c0_17, %c0_18] : memref<96x96xbf16, #tpu.memory_space<vmem>>, vector<96x96xbf16>
    %c0_19 = arith.constant 0 : index
    %c0_20 = arith.constant 0 : index
    %50 = vector.load %arg5[%c0_19, %c0_20] : memref<32x1xf32, #tpu.memory_space<vmem>>, vector<32x1xf32>
    %c16_i32_21 = arith.constant 16 : i32
    %51 = tpu.dynamic_rotate %48 by %c16_i32_21 dim 1 : vector<32x256xf32>, i32 -> vector<32x256xf32>
    %cst_22 = arith.constant 0.000000e+00 : f32
    %52 = vector.shape_cast %5 : vector<1x256xi1> to vector<1x256xi1>
    %53 = vector.broadcast %52 : vector<1x256xi1> to vector<32x256xi1>
    %54 = vector.broadcast %cst_22 : f32 to vector<32x256xf32>
    %55 = arith.select %53, %51, %54 : vector<32x256xi1>, vector<32x256xf32>
    %c240_i32_23 = arith.constant 240 : i32
    %56 = tpu.dynamic_rotate %48 by %c240_i32_23 dim 1 : vector<32x256xf32>, i32 -> vector<32x256xf32>
    %cst_24 = arith.constant 0.000000e+00 : f32
    %57 = vector.shape_cast %8 : vector<1x256xi1> to vector<1x256xi1>
    %58 = vector.broadcast %57 : vector<1x256xi1> to vector<32x256xi1>
    %59 = vector.broadcast %cst_24 : f32 to vector<32x256xf32>
    %60 = arith.select %58, %56, %59 : vector<32x256xi1>, vector<32x256xf32>
    %61 = tpu.concatenate %55, %48, %60 in 0 : vector<32x256xf32>, vector<32x256xf32>, vector<32x256xf32> -> vector<96x256xf32>
    %62 = arith.truncf %61 : vector<96x256xf32> to vector<96x256xbf16>
    %cst_25 = arith.constant dense<0.000000e+00> : vector<96x256xf32>
    %63 = tpu.matmul %49, %62, %cst_25 {dimension_numbers = #tpu.dot_dimension_numbers<[1], [0], [0], [1], [0, 0, 1, 1], [], []>} : vector<96x96xbf16>, vector<96x256xbf16>, vector<96x256xf32> -> vector<96x256xf32>
    %64 = vector.extract_strided_slice %63 {offsets = [0, 0], sizes = [32, 256], strides = [1, 1]} : vector<96x256xf32> to vector<32x256xf32>
    %c1_i32_26 = arith.constant 1 : i32
    %65 = tpu.dynamic_rotate %64 by %c1_i32_26 dim 1 : vector<32x256xf32>, i32 -> vector<32x256xf32>
    %cst_27 = arith.constant 0.000000e+00 : f32
    %66 = vector.shape_cast %11 : vector<1x256xi1> to vector<1x256xi1>
    %67 = vector.broadcast %66 : vector<1x256xi1> to vector<32x256xi1>
    %68 = vector.broadcast %cst_27 : f32 to vector<32x256xf32>
    %69 = arith.select %67, %65, %68 : vector<32x256xi1>, vector<32x256xf32>
    %70 = vector.extract_strided_slice %63 {offsets = [64, 0], sizes = [32, 256], strides = [1, 1]} : vector<96x256xf32> to vector<32x256xf32>
    %c255_i32_28 = arith.constant 255 : i32
    %71 = tpu.dynamic_rotate %70 by %c255_i32_28 dim 1 : vector<32x256xf32>, i32 -> vector<32x256xf32>
    %cst_29 = arith.constant 0.000000e+00 : f32
    %72 = vector.shape_cast %14 : vector<1x256xi1> to vector<1x256xi1>
    %73 = vector.broadcast %72 : vector<1x256xi1> to vector<32x256xi1>
    %74 = vector.broadcast %cst_29 : f32 to vector<32x256xf32>
    %75 = arith.select %73, %71, %74 : vector<32x256xi1>, vector<32x256xf32>
    %76 = arith.addf %69, %75 : vector<32x256xf32>
    %77 = vector.extract_strided_slice %63 {offsets = [32, 0], sizes = [32, 256], strides = [1, 1]} : vector<96x256xf32> to vector<32x256xf32>
    %78 = vector.broadcast %50 : vector<32x1xf32> to vector<32x256xf32>
    %79 = arith.addf %77, %78 : vector<32x256xf32>
    %80 = arith.addf %76, %79 : vector<32x256xf32>
    %cst_30 = arith.constant dense<0.000000e+00> : vector<32xf32>
    %81 = vector.multi_reduction <add>, %80, %cst_30 [1] : vector<32x256xf32> to vector<32xf32>
    %82 = vector.shape_cast %81 : vector<32xf32> to vector<32x1xf32>
    %cst_31 = arith.constant 3.906250e-03 : f32
    %83 = vector.broadcast %cst_31 : f32 to vector<32x1xf32>
    %84 = arith.mulf %82, %83 : vector<32x1xf32>
    %cst_32 = arith.constant dense<0xFF800000> : vector<32xf32>
    %85 = vector.multi_reduction <maximumf>, %80, %cst_32 [1] : vector<32x256xf32> to vector<32xf32>
    %86 = vector.shape_cast %85 : vector<32xf32> to vector<32x1xf32>
    %87 = tpu.iota {dimensions = array<i32: 1>} : vector<32x2xi32>
    %c0_i32 = arith.constant 0 : i32
    %88 = vector.broadcast %c0_i32 : i32 to vector<32x2xi32>
    %89 = arith.cmpi eq, %87, %88 : vector<32x2xi32>
    %90 = vector.shape_cast %84 : vector<32x1xf32> to vector<32x1xf32>
    %91 = vector.broadcast %90 : vector<32x1xf32> to vector<32x2xf32>
    %92 = vector.shape_cast %86 : vector<32x1xf32> to vector<32x1xf32>
    %93 = vector.broadcast %92 : vector<32x1xf32> to vector<32x2xf32>
    %94 = arith.select %89, %91, %93 : vector<32x2xi1>, vector<32x2xf32>
    %c0_33 = arith.constant 0 : index
    %c0_34 = arith.constant 0 : index
    %95 = vector.load %arg6[%c0_33, %c0_34] : memref<8x32xf32, #tpu.memory_space<vmem>>, vector<8x32xf32>
    %cst_35 = arith.constant dense<0.000000e+00> : vector<8x2xf32>
    %96 = tpu.matmul %95, %94, %cst_35 {dimension_numbers = #tpu.dot_dimension_numbers<[1], [0], [0], [1], [0, 0, 1, 1], [], []>} : vector<8x32xf32>, vector<32x2xf32>, vector<8x2xf32> -> vector<8x2xf32>
    %c0_36 = arith.constant 0 : index
    %c0_37 = arith.constant 0 : index
    %97 = vector.load %arg7[%c0_36, %c0_37] : memref<8x1xf32, #tpu.memory_space<vmem>>, vector<8x1xf32>
    %98 = vector.broadcast %97 : vector<8x1xf32> to vector<8x2xf32>
    %99 = arith.addf %96, %98 : vector<8x2xf32>
    %cst_38 = arith.constant 0.000000e+00 : f32
    %100 = vector.broadcast %cst_38 : f32 to vector<8x2xf32>
    %101 = arith.maximumf %99, %100 : vector<8x2xf32>
    %c0_39 = arith.constant 0 : index
    %c0_40 = arith.constant 0 : index
    %102 = vector.load %arg8[%c0_39, %c0_40] : memref<32x8xf32, #tpu.memory_space<vmem>>, vector<32x8xf32>
    %cst_41 = arith.constant dense<0.000000e+00> : vector<32x2xf32>
    %103 = tpu.matmul %102, %101, %cst_41 {dimension_numbers = #tpu.dot_dimension_numbers<[1], [0], [0], [1], [0, 0, 1, 1], [], []>} : vector<32x8xf32>, vector<8x2xf32>, vector<32x2xf32> -> vector<32x2xf32>
    %c0_42 = arith.constant 0 : index
    %c0_43 = arith.constant 0 : index
    %104 = vector.load %arg9[%c0_42, %c0_43] : memref<32x1xf32, #tpu.memory_space<vmem>>, vector<32x1xf32>
    %105 = vector.broadcast %104 : vector<32x1xf32> to vector<32x2xf32>
    %106 = arith.addf %103, %105 : vector<32x2xf32>
    %cst_44 = arith.constant dense<0.000000e+00> : vector<32xf32>
    %107 = vector.multi_reduction <add>, %106, %cst_44 [1] : vector<32x2xf32> to vector<32xf32>
    %108 = vector.shape_cast %107 : vector<32xf32> to vector<32x1xf32>
    %109 = arith.negf %108 : vector<32x1xf32>
    %110 = math.exp %109 : vector<32x1xf32>
    %cst_45 = arith.constant 1.000000e+00 : f32
    %111 = vector.broadcast %cst_45 : f32 to vector<32x1xf32>
    %112 = arith.addf %111, %110 : vector<32x1xf32>
    %113 = arith.divf %111, %112 : vector<32x1xf32>
    %cst_46 = arith.constant 1.000000e+00 : f32
    %114 = vector.broadcast %cst_46 : f32 to vector<32x1xf32>
    %115 = arith.mulf %113, %114 : vector<32x1xf32>
    %116 = vector.broadcast %115 : vector<32x1xf32> to vector<32x256xf32>
    %117 = arith.mulf %80, %116 : vector<32x256xf32>
    %118 = arith.addf %117, %1 : vector<32x256xf32>
    %c0_47 = arith.constant 0 : index
    %c0_48 = arith.constant 0 : index
    %c0_49 = arith.constant 0 : index
    %119 = vector.load %arg11[%c0_47, %c0_48, %c0_49] : memref<1x32x256xf32, #tpu.memory_space<vmem>>, vector<1x32x256xf32>
    %120 = vector.shape_cast %119 : vector<1x32x256xf32> to vector<32x256xf32>
    %121 = vector.shape_cast %118 : vector<32x256xf32> to vector<1x32x256xf32>
    tpu.vector_store %arg11[%c0_47, %c0_48, %c0_49], %121 {strides = array<i32>} : memref<1x32x256xf32, #tpu.memory_space<vmem>>, vector<1x32x256xf32>,
    return
  }
  func.func @transform_0(%arg0: i32) -> (i32, i32, i32) {
    %c0_i32 = arith.constant 0 : i32
    %c0_i32_0 = arith.constant 0 : i32
    %c0_i32_1 = arith.constant 0 : i32
    return %arg0, %c0_i32, %c0_i32_0 : i32, i32, i32
  }
  func.func @transform_1(%arg0: i32) -> (i32, i32) {
    %c0_i32 = arith.constant 0 : i32
    %c0_i32_0 = arith.constant 0 : i32
    %c0_i32_1 = arith.constant 0 : i32
    return %c0_i32, %c0_i32_0 : i32, i32
  }
  func.func @transform_2(%arg0: i32) -> (i32, i32) {
    %c0_i32 = arith.constant 0 : i32
    %c0_i32_0 = arith.constant 0 : i32
    %c0_i32_1 = arith.constant 0 : i32
    return %c0_i32, %c0_i32_0 : i32, i32
  }
  func.func @transform_3(%arg0: i32) -> (i32, i32) {
    %c0_i32 = arith.constant 0 : i32
    %c0_i32_0 = arith.constant 0 : i32
    %c0_i32_1 = arith.constant 0 : i32
    return %c0_i32, %c0_i32_0 : i32, i32
  }
  func.func @transform_4(%arg0: i32) -> (i32, i32) {
    %c0_i32 = arith.constant 0 : i32
    %c0_i32_0 = arith.constant 0 : i32
    %c0_i32_1 = arith.constant 0 : i32
    return %c0_i32, %c0_i32_0 : i32, i32
  }
  func.func @transform_5(%arg0: i32) -> (i32, i32) {
    %c0_i32 = arith.constant 0 : i32
    %c0_i32_0 = arith.constant 0 : i32
    %c0_i32_1 = arith.constant 0 : i32
    return %c0_i32, %c0_i32_0 : i32, i32
  }
  func.func @transform_6(%arg0: i32) -> (i32, i32) {
    %c0_i32 = arith.constant 0 : i32
    %c0_i32_0 = arith.constant 0 : i32
    %c0_i32_1 = arith.constant 0 : i32
    return %c0_i32, %c0_i32_0 : i32, i32
  }
  func.func @transform_7(%arg0: i32) -> (i32, i32) {
    %c0_i32 = arith.constant 0 : i32
    %c0_i32_0 = arith.constant 0 : i32
    %c0_i32_1 = arith.constant 0 : i32
    return %c0_i32, %c0_i32_0 : i32, i32
  }
  func.func @transform_8(%arg0: i32) -> (i32, i32) {
    %c0_i32 = arith.constant 0 : i32
    %c0_i32_0 = arith.constant 0 : i32
    %c0_i32_1 = arith.constant 0 : i32
    return %c0_i32, %c0_i32_0 : i32, i32
  }
  func.func @transform_9(%arg0: i32) -> (i32, i32) {
    %c0_i32 = arith.constant 0 : i32
    %c0_i32_0 = arith.constant 0 : i32
    %c0_i32_1 = arith.constant 0 : i32
    return %c0_i32, %c0_i32_0 : i32, i32
  }
  func.func @transform_10(%arg0: i32) -> (i32, i32, i32) {
    %c0_i32 = arith.constant 0 : i32
    %c0_i32_0 = arith.constant 0 : i32
    %c0_i32_1 = arith.constant 0 : i32
    return %arg0, %c0_i32, %c0_i32_0 : i32, i32, i32
  }
}

</mosaic_0001>

<bundles_post_ra>
// kernel: tpu_custom_call.1
= control target key start
LH: loop header
LB: loop body
LE: loop exit
PB: predicated region body
PF: predicated region fallthrough
CT: control target
= control target key end

     0   :  { %15 = vsyncpa [#allocation3], 0  ;;  %s2635_s0 = inlined_call_operand.vmem [shape: f32[2,32,256], index: 0, kind: input, shape index: {}]   ;;  %s2636_s1 = inlined_call_operand.hbm [shape: bf16[96,96], index: 1, kind: input, shape index: {}]   ;;  %s2637_s2 = inlined_call_operand.vmem [shape: f32[32,1], index: 2, kind: input, shape index: {}]   ;;  %s2638_s3 = inlined_call_operand.hbm [shape: bf16[96,96], index: 3, kind: input, shape index: {}]   ;;  %s2639_s4 = inlined_call_operand.vmem [shape: f32[32,1], index: 4, kind: input, shape index: {}]   ;;  %s2640_s5 = inlined_call_operand.vmem [shape: f32[8,32], index: 5, kind: input, shape index: {}]   ;;  %s2641_s6 = inlined_call_operand.vmem [shape: f32[8,1], index: 6, kind: input, shape index: {}]   ;;  %s2642_s7 = inlined_call_operand.vmem [shape: f32[32,8], index: 7, kind: input, shape index: {}]   ;;  %s2643_s8 = inlined_call_operand.vmem [shape: f32[32,1], index: 8, kind: input, shape index: {}]   ;;  %s2644_s9 = inlined_call_operand.vmem [shape: f32[4,256], index: 9, kind: input, shape index: {}]   ;;  %s2645_s10 = inlined_call_operand.hbm [shape: f32[2,32,256], index: 10, kind: output, shape index: {}]  }
   0x1   :  { %16 = vsyncpa [#allocation6], 0 }
   0x2   :  { %17 = vsyncpa [#allocation4], 0 }
   0x3   :  { %19 = vsyncpa [#allocation4 + $0x1], 0  ;;  %s1976_s13 = smov 0   ;;  %s1978_s14 = smov 0  }
   0x4   :  { %s1980_s15 = smov 0   ;;  %s1982_s16 = smov 0  }
   0x5 LB: > { %s1997_s17 = sadd.s32 4294967295, %s1909_s16   ;;  %s1443_s18 = sadd.s32 4294967294, %s1909_s16   ;;  %s1909_s16 = sphi %s1982_s16, %s2662_s16   ;;  %s1905_s15 = sphi %s1980_s15, %s2661_s15   ;;  %s1901_s14 = sphi %s1978_s14, %s2660_s14   ;;  %s1897_s13 = sphi %s1976_s13, %s2659_s13  }
   0x6   : > { %s2001_s19 = sadd.s32 1, %s1909_s16   ;;  %s247_s20 = sadd.s32 1, %s1905_s15 }
   0x7   : > { %s244_s21 = ssub.s32 %s1909_s16, %s2001_s19  ;;  %p257_p0 = scmp.ne.s32.totalorder %s1905_s15, %s1901_s14 }
   0x8   : > { %p245_p1 = scmp.eq.s32.totalorder %s244_s21, 0  ;;  %p258_p2 = scmp.eq.s32.totalorder %s1997_s17, 1 }
   0x9   : > { %p263_p3 = scmp.ne.s32.totalorder %s1901_s14, %s1897_s13  ;;  %p264_p4 = scmp.eq.s32.totalorder %s1443_s18, 1 }
   0xa   : > { %s2012_s22 = scalar_select %p245_p1, %s1905_s15, %s247_s20  }
   0xb   : > { %p2014_p5 = por %p258_p2, %p257_p0  ;;  %p2018_p6 = por %p264_p4, %p263_p3 }
   0xc   : > { %2646 = sst [smem:[#allocation11_spill]] %s2012_s22  ;;  %p1444_p7 = scmp.ge.s32.totalorder %s1909_s16, 1 }
   0xd   : > { %p271_p8 = scmp.lt.s32.totalorder %s1909_s16, 3  ;;  %p1625_p9 = scmp.eq.s32.totalorder %s1997_s17, 0 }
   0xe   : > { %s282_s28 = sshll.u32 %s2636_s1, 4  ;;  %s1911_s29 = smov [#allocation2]   ;;  %s283_s28 = int_to_ptr.hbm [resolvable:$true] %s282_s28 }
   0xf   : > { %p2025_p10 = pnand %p1444_p7, %p271_p8  ;;  %s284_s30 = sshll.u32 %s1911_s29, 4  ;;  %s285_s30 = int_to_ptr.vmem [resolvable:$true] %s284_s30 }
  0x10   : > { %s299_s18 = sshll.u32 %s2638_s3, 4  ;;  %s1912_s20 = smov 64   ;;  %s300_s18 = int_to_ptr.hbm [resolvable:$true] %s299_s18 }
  0x11   : > { %p1614_p11 = pneg %p2025_p10  ;;  %s1913_s21 = smov 4  }
  0x12   : > { %s1914_s22 = smov [#allocation5]   ;;  %343 = sbr.rel (%p2025_p10) target bundleno = 1587 (0x633), region = 60 }
  0x13   : > { %p1615_p12 = pnand %p1625_p9, %p1614_p11  ;;  %s301_s26 = sshll.u32 %s1914_s22, 4  ;;  %s302_s26 = int_to_ptr.vmem [resolvable:$true] %s301_s26 }
  0x15   : > { %1617 = dma.hbm_to_vmem [thread:$0]  (!%p1615_p12), %s283_s28, 768, %s285_s30, [#allocation3], %s1912_s20, %s1912_s20, %s1913_s21  }
  0x16   : > { %1620 = dma.hbm_to_vmem [thread:$0]  (!%p1615_p12), %s300_s18, 768, %s302_s26, [#allocation6], %s1912_s20, %s1912_s20, %s1913_s21  }
  0x17   : > { %1884 = dma.done.wait (%p1625_p9), [#allocation3], 768  }
  0x18   : > { %1886 = vsyncadd (%p1625_p9), [#allocation3], 4294966528 }
  0x19   : > { %1888 = dma.done.wait (%p1625_p9), [#allocation6], 768  }
  0x1a   : > { %1890 = vsyncadd (%p1625_p9), [#allocation6], 4294966528  ;;  %p387_p13 = scmp.lt.s32.totalorder %s1997_s17, 1  ;;  %s1915_s30 = smov 112   ;;  %v1917_v12 = vmov 0   ;;  %v401_v13 = vld [vmem:[%s2644_s9] sm:$0xff]  ;;  %v435_v17 = vlaneseq }
  0x1b   : > { %s1916_s11 = smov 16   ;;  %1712 = vset.pattern.permute.xlu1 %v1917_v12  ;;  %1713 = vset.pattern.permute.xlu2 %v1917_v12  ;;  %vm402_vm0 = vcmp.gt.f32.partialorder %v401_v13, 0.5  ;;  %vm542_vm11 = vcmask 785408   ;;  %s1919_s28 = smov 127  }
  0x1c   : > { %s388_s22 = scalar_select %p387_p13, %s1997_s17, 1  ;;  %1714 = vset.pattern.permute.xlu0 %v1917_v12  ;;  %v2099_v14 = vsel %vm402_vm0, 1, %v1917_v12  ;;  %v2103_v21 = vand.u32 127, %v435_v17 }
  0x1d   : > { %v486_v15 = vperm.slane %v2099_v14, 1  ;;  %v487_v18 = vperm.slane %v2099_v14, 5  ;;  %v447_v46 = vperm.slane %v2099_v14, 0  ;;  %v448_v49 = vperm.slane %v2099_v14, 4  ;;  %s1601_s26 = sshll.u32 %s1997_s17, 6  ;;  %s1859_s25 = scalar_lea.hbm %s2645_s10, 128 }
  0x1e   : > { %s1588_s27 = sshll.u32 %s388_s22, 6  ;;  %vm477_vm2 = vcmp.lt.s32.totalorder %v2103_v21, 112  ;;  %vm437_vm6 = vcmp.lt.s32.totalorder %v2103_v21, 16  ;;  %vm694_vm12 = vcmp.lt.s32.totalorder %v2103_v21, 127  ;;  %vm655_vm13 = vcmp.lt.s32.totalorder %v2103_v21, 1 }
  0x1f   : > { %s2054_s29 = scalar_lea.vmem %s2635_s0, %s1588_s27  ;;  %v488_v20 = vperm.slane %v486_v15, 1  ;;  %v489_v22 = vperm.slane %v487_v18, 1  ;;  %v449_v53 = vperm.slane %v447_v46, 0  ;;  %v450_v56 = vperm.slane %v448_v49, 0  ;;  %v1589_v18 = vld [vmem:[#allocation2] sm:$0xff]  ;;  %s1918_s27 = smov 1  }
  0x20   : > { %v2057_v0 = vld [vmem:[%s2054_s29 + $0x20] sm:$0xff]  ;;  %v2060_v1 = vld [vmem:[%s2054_s29 + $0x30] sm:$0xff]  ;;  %v2076_v6 = vld [vmem:[%s2054_s29 + $0x28] sm:$0xff] }
  0x21   : > { %v2063_v2 = vld [vmem:[%s2054_s29] sm:$0xff]  ;;  %v1672_v3 = vpack.i.bf16 %v2060_v1, %v2057_v0  ;;  %v2068_v4 = vld [vmem:[%s2054_s29 + $0x10] sm:$0xff]  ;;  %v2079_v7 = vld [vmem:[%s2054_s29 + $0x38] sm:$0xff]  ;;  %vm490_vm1 = vcmp.eq.s32.totalorder %v488_v20, 1  ;;  %vm491_vm3 = vcmp.eq.s32.totalorder %v489_v22, 1  ;;  %v506_v51 = vpack.c.bf16 %v2060_v1, %v2057_v0 }
  0x22   : > { %v1682_v5 = vpack.i.bf16 %v2068_v4, %v2063_v2  ;;  %v2082_v8 = vld [vmem:[%s2054_s29 + $0x8] sm:$0xff]  ;;  %v2085_v9 = vld [vmem:[%s2054_s29 + $0x18] sm:$0xff]  ;;  %v1677_v10 = vpack.i.bf16 %v2079_v7, %v2076_v6  ;;  %vm2106_vm4 = vmpackc.low %vm490_vm1, %vm490_vm1  ;;  %v507_v52 = vpack.c.bf16 %v2079_v7, %v2076_v6  ;;  %v504_v61 = vpack.c.bf16 %v2068_v4, %v2063_v2 }
  0x23   : > { %1673 = vrot.lane.b32.xlu0 %v1672_v3, %s1915_s30  ;;  %1693 = vrot.lane.b32.xlu2 %v1672_v3, %s1916_s11  ;;  %v1687_v11 = vpack.i.bf16 %v2085_v9, %v2082_v8  ;;  %vm2118_vm5 = vmpackc.low %vm491_vm3, %vm491_vm3  ;;  %v505_v62 = vpack.c.bf16 %v2085_v9, %v2082_v8  ;;  %vm451_vm7 = vcmp.eq.s32.totalorder %v449_v53, 1  ;;  %vm452_vm8 = vcmp.eq.s32.totalorder %v450_v56, 1  ;;  %v417_v20 = vld [vmem:[%s2637_s2 + $0x10] sm:$0xff]  ;;  %v1600_v8 = vld [vmem:[#allocation5 + $0x28] sm:$0xff] }
  0x24   : > { %1683 = vrot.lane.b32.xlu1 %v1682_v5, %s1915_s30  ;;  %vm2157_vm9 = vmpackc.low %vm451_vm7, %vm451_vm7  ;;  %v1591_v22 = vld [vmem:[#allocation2 + $0x10] sm:$0xff]  ;;  %vm1135_vm3 = vcmask 261120  }
  0x25   : > { %vm2161_vm10 = vmpackc.low %vm452_vm8, %vm452_vm8  ;;  %v1599_v7 = vld [vmem:[#allocation5 + $0x20] sm:$0xff] }
  0x2b   : > { %1678 = vrot.lane.b32.xlu0 %v1677_v10, %s1915_s30  ;;  %1698 = vrot.lane.b32.xlu2 %v1677_v10, %s1916_s11 }
  0x2c   : > { %1688 = vrot.lane.b32.xlu1 %v1687_v11, %s1915_s30 }
  0x33   : > { %1703 = vrot.lane.b32.xlu0 %v1682_v5, %s1916_s11 }
  0x34   : > { %1708 = vrot.lane.b32.xlu1 %v1687_v11, %s1916_s11 }
  0x3c   : > { %737 = vperm.xlu1 %1712, %v417_v20  }
  0x7d   : > { %v1694_v23 = vpop.permute.xlu2 %1693 }
  0x7e   : > { %v1696_v57 = vunpack.i.h.bf16 %v1694_v23  ;;  %v1695_v58 = vunpack.i.l.bf16 %v1694_v23  ;;  %v1592_v23 = vld [vmem:[#allocation2 + $0x18] sm:$0xff] }
  0x85   : > { %v1699_v50 = vpop.permute.xlu2 %1698 }
  0x86   : > { %v1701_v59 = vunpack.i.h.bf16 %v1699_v50  ;;  %v1700_v60 = vunpack.i.l.bf16 %v1699_v50 }
  0x88   : > { %v444_v5 = vsel %vm437_vm6, %v1700_v60, %v1695_v58  ;;  %v445_v6 = vsel %vm437_vm6, %v1701_v59, %v1696_v57  ;;  %v440_v2 = vsel %vm437_vm6, %v1695_v58, %v1700_v60  ;;  %v441_v4 = vsel %vm437_vm6, %v1696_v57, %v1701_v59 }
  0x89   : > { %v1485_v13 = vpack.c.bf16 %v445_v6, %v444_v5  ;;  %v1503_v15 = vpack.c.bf16 %v441_v4, %v440_v2  ;;  %v703_v5 = vperm.slane %v2099_v14, 3  ;;  %v704_v6 = vperm.slane %v2099_v14, 7 }
  0x8a   : > { %v664_v2 = vperm.slane %v2099_v14, 2  ;;  %v665_v4 = vperm.slane %v2099_v14, 6 }
  0x95   : > { %v1674_v16 = vpop.permute.xlu0 %1673 }
  0x96   : > { %v1684_v19 = vpop.permute.xlu1 %1683  ;;  %v1676_v25 = vunpack.i.h.bf16 %v1674_v16  ;;  %v1675_v26 = vunpack.i.l.bf16 %v1674_v16 }
  0x97   : > { %v1686_v30 = vunpack.i.h.bf16 %v1684_v19  ;;  %v1685_v31 = vunpack.i.l.bf16 %v1684_v19  ;;  %v1590_v19 = vld [vmem:[#allocation2 + $0x8] sm:$0xff] }
  0x9d   : > { %v1679_v24 = vpop.permute.xlu0 %1678 }
  0x9e   : > { %v1681_v27 = vunpack.i.h.bf16 %v1679_v24  ;;  %v1680_v28 = vunpack.i.l.bf16 %v1679_v24  ;;  %v1689_v29 = vpop.permute.xlu1 %1688  ;;  %v418_v24 = vld [vmem:[%s2637_s2 + $0x18] sm:$0xff] }
  0x9f   : > { %v1691_v32 = vunpack.i.h.bf16 %v1689_v29  ;;  %v1690_v33 = vunpack.i.l.bf16 %v1689_v29  ;;  %742 = vperm.xlu2 %1713, %v418_v24  }
  0xa0   : > { %v480_v35 = vsel %vm477_vm2, %v1675_v26, %v1680_v28  ;;  %v481_v36 = vsel %vm477_vm2, %v1676_v25, %v1681_v27  ;;  %v484_v37 = vsel %vm477_vm2, %v1680_v28, %v1675_v26  ;;  %v485_v38 = vsel %vm477_vm2, %v1681_v27, %v1676_v25  ;;  %v1593_v25 = vld [vmem:[#allocation2 + $0x20] sm:$0xff]  ;;  %v1594_v26 = vld [vmem:[#allocation2 + $0x28] sm:$0xff] }
  0xa1   : > { %v1479_v40 = vpack.c.bf16 %v481_v36, %v480_v35  ;;  %v1497_v41 = vpack.c.bf16 %v485_v38, %v484_v37  ;;  %v478_v42 = vsel %vm477_vm2, %v1685_v31, %v1690_v33  ;;  %v479_v43 = vsel %vm477_vm2, %v1686_v30, %v1691_v32 }
  0xa2   : > { %v482_v44 = vsel %vm477_vm2, %v1690_v33, %v1685_v31  ;;  %v483_v45 = vsel %vm477_vm2, %v1691_v32, %v1686_v30  ;;  %v1482_v47 = vpack.c.bf16 %v479_v43, %v478_v42 }
  0xa3   : > { %1480 = vmatpush.bf16.msk.msra.mxu0 %vm2106_vm4, %v1479_v40  ;;  %1498 = vmatpush.bf16.msk.msra.mxu1 %vm2118_vm5, %v1497_v41  ;;  %v1500_v48 = vpack.c.bf16 %v483_v45, %v482_v44 }
  0xa5   : > { %v1704_v54 = vpop.permute.xlu0 %1703 }
  0xa6   : > { %v1709_v55 = vpop.permute.xlu1 %1708  ;;  %v1706_v63 = vunpack.i.h.bf16 %v1704_v54  ;;  %v1705_v0 = vunpack.i.l.bf16 %v1704_v54  ;;  %v416_v54 = vld [vmem:[%s2637_s2 + $0x8] sm:$0xff] }
  0xa7   : > { %1483 = vmatpush.bf16.msk.msra.mxu0 %vm2106_vm4, %v1482_v47  ;;  %1501 = vmatpush.bf16.msk.msra.mxu1 %vm2118_vm5, %v1500_v48  ;;  %v1711_v1 = vunpack.i.h.bf16 %v1709_v55  ;;  %v1710_v3 = vunpack.i.l.bf16 %v1709_v55 }
  0xa9   : > { %v442_v9 = vsel %vm437_vm6, %v1710_v3, %v1705_v0  ;;  %v443_v10 = vsel %vm437_vm6, %v1711_v1, %v1706_v63  ;;  %v438_v11 = vsel %vm437_vm6, %v1705_v0, %v1710_v3  ;;  %v439_v12 = vsel %vm437_vm6, %v1706_v63, %v1711_v1 }
  0xaa   : > { %v1488_v16 = vpack.c.bf16 %v443_v10, %v442_v9  ;;  %v1506_v17 = vpack.c.bf16 %v439_v12, %v438_v11  ;;  %v2235_v9 = vperm.slane %v703_v5, 3  ;;  %v2237_v10 = vperm.slane %v704_v6, 3 }
  0xab   : > { %565 = vmatpush.bf16.msra.mxu0 %v506_v51  ;;  %604 = vmatpush.bf16.msra.mxu1 %v507_v52  ;;  %v415_v51 = vld [vmem:[%s2637_s2] sm:$0xff] }
  0xac   : > { %vm707_vm14 = vcmp.eq.s32.totalorder %v2235_v9, 1  ;;  %vm708_vm15 = vcmp.eq.s32.totalorder %v2237_v10, 1 }
  0xae   : > { %v738_v59 = vpop.permute.xlu1 %737 }
  0xaf   : > { %566 = vmatpush.bf16.msra.mxu0 %v504_v61  ;;  %605 = vmatpush.bf16.msra.mxu1 %v505_v62 }
  0xb3   : > { %1486 = vmatpush.bf16.msk.msra.mxu0 %vm2157_vm9, %v1485_v13  ;;  %1504 = vmatpush.bf16.msk.msra.mxu1 %vm2161_vm10, %v1503_v15  ;;  %v2240_v15 = vperm.slane %v664_v2, 2 }
  0xb5   : > { %vm668_vm0 = vcmp.eq.s32.totalorder %v2240_v15, 1 }
  0xb7   : > { %1489 = vmatpush.bf16.msk.msra.mxu0 %vm2157_vm9, %v1488_v16  ;;  %1507 = vmatpush.bf16.msk.msra.mxu1 %vm2161_vm10, %v1506_v17  ;;  %v2242_v16 = vperm.slane %v665_v4, 2 }
  0xb9   : > { %vm669_vm1 = vcmp.eq.s32.totalorder %v2242_v16, 1 }
  0xba   : > { %1490 = vmatmul.msk.bf16.vlgmr.msra.gmra.mxu0 %vm542_vm11, %v1589_v18  ;;  %1508 = vmatmul.msk.bf16.vlgmr.msra.gmra.mxu1 %vm542_vm11, %v1589_v18 }
  0xca   : > { %1491 = vmatmul.msk.bf16.gmra.mxu0 %vm542_vm11, %v1590_v19  ;;  %1509 = vmatmul.msk.bf16.gmra.mxu1 %vm542_vm11, %v1590_v19 }
  0xda   : > { %1492 = vmatmul.msk.bf16.gmra.mxu0 %vm542_vm11, %v1591_v22  ;;  %1510 = vmatmul.msk.bf16.gmra.mxu1 %vm542_vm11, %v1591_v22 }
  0xea   : > { %1493 = vmatmul.msk.bf16.gmra.mxu0 %vm542_vm11, %v1592_v23  ;;  %1511 = vmatmul.msk.bf16.gmra.mxu1 %vm542_vm11, %v1592_v23 }
  0xf9   : > { %v743_v55 = vpop.permute.xlu2 %742 }
  0xfa   : > { %1494 = vmatmul.msk.bf16.gmra.mxu0 %vm542_vm11, %v1593_v25  ;;  %1512 = vmatmul.msk.bf16.gmra.mxu1 %vm542_vm11, %v1593_v25 }
 0x10a   : > { %1495 = vmatmul.msk.bf16.gmra.mxu0 %vm542_vm11, %v1594_v26  ;;  %1513 = vmatmul.msk.bf16.gmra.mxu1 %vm542_vm11, %v1594_v26 }
 0x137   : > { %v570_v27 = vpop.f32.mrf.mxu0  ;;  %v609_v28 = vpop.f32.mrf.mxu1 }
 0x138   : > { %647 = vrot.lane.b32.xlu2 %v609_v28, %s1918_s27  ;;  %639 = vrot.lane.b32.xlu0 %v570_v27, %s1918_s27 }
 0x13f   : > { %v572_v29 = vpop.f32.mrf.mxu0  ;;  %v611_v30 = vpop.f32.mrf.mxu1 }
 0x140   : > { %649 = vrot.lane.b32.xlu0 %v611_v30, %s1918_s27  ;;  %641 = vrot.lane.b32.xlu1 %v572_v29, %s1918_s27 }
 0x147   : > { %v575_v31 = vpop.f32.mrf.mxu0  ;;  %v614_v32 = vpop.f32.mrf.mxu1 }
 0x148   : > { %651 = vrot.lane.b32.xlu1 %v614_v32, %s1918_s27  ;;  %643 = vrot.lane.b32.xlu2 %v575_v31, %s1918_s27 }
 0x14f   : > { %v577_v33 = vpop.f32.mrf.mxu0  ;;  %v616_v35 = vpop.f32.mrf.mxu1 }
 0x150   : > { %653 = vrot.lane.b32.xlu2 %v616_v35, %s1918_s27  ;;  %645 = vrot.lane.b32.xlu0 %v577_v33, %s1918_s27 }
 0x157   : > { %v2207_v36 = vpop.f32.mrf.mxu0  ;;  %v2209_v37 = vpop.f32.mrf.mxu1 }
 0x15f   : > { %v2211_v38 = vpop.f32.mrf.mxu0  ;;  %v2213_v40 = vpop.f32.mrf.mxu1 }
 0x167   : > { %v585_v41 = vpop.f32.mrf.mxu0  ;;  %v624_v42 = vpop.f32.mrf.mxu1 }
 0x168   : > { %v749_v14 = vadd.f32 %v738_v59, %v585_v41  ;;  %v750_v19 = vadd.f32 %v738_v59, %v624_v42 }
 0x16f   : > { %v587_v43 = vpop.f32.mrf.mxu0  ;;  %v626_v44 = vpop.f32.mrf.mxu1 }
 0x170   : > { %v751_v23 = vadd.f32 %v743_v55, %v587_v43  ;;  %v752_v24 = vadd.f32 %v743_v55, %v626_v44 }
 0x177   : > { %v590_v45 = vpop.f32.mrf.mxu0  ;;  %v629_v46 = vpop.f32.mrf.mxu1 }
 0x178   : > { %686 = vrot.lane.b32.xlu0 %v629_v46, %s1919_s28  ;;  %678 = vrot.lane.b32.xlu1 %v590_v45, %s1919_s28 }
 0x17f   : > { %v592_v47 = vpop.f32.mrf.mxu0  ;;  %v631_v48 = vpop.f32.mrf.mxu1 }
 0x180   : > { %680 = vrot.lane.b32.xlu2 %v592_v47, %s1919_s28 }
 0x187   : > { %v595_v49 = vpop.f32.mrf.mxu0  ;;  %v634_v50 = vpop.f32.mrf.mxu1 }
 0x188   : > { %690 = vrot.lane.b32.xlu2 %v634_v50, %s1919_s28  ;;  %682 = vrot.lane.b32.xlu0 %v595_v49, %s1919_s28 }
 0x18f   : > { %v597_v52 = vpop.f32.mrf.mxu0  ;;  %v636_v53 = vpop.f32.mrf.mxu1 }
 0x190   : > { %727 = vperm.xlu2 %1713, %v415_v51   ;;  %692 = vrot.lane.b32.xlu0 %v636_v53, %s1919_s28 }
 0x191   : > { %684 = vrot.lane.b32.xlu1 %v597_v52, %s1919_s28 }
 0x192   : > { %v648_v56 = vpop.permute.xlu2 %647 }
 0x198   : > { %732 = vperm.xlu0 %1714, %v416_v54  }
 0x199   : > { %688 = vrot.lane.b32.xlu1 %v631_v48, %s1919_s28 }
 0x1a2   : > { %v644_v58 = vpop.permute.xlu2 %643 }
 0x1aa   : > { %v640_v57 = vpop.permute.xlu0 %639  ;;  %v654_v61 = vpop.permute.xlu2 %653 }
 0x1ab   : > { %v656_v27 = vsel %vm655_vm13, %v640_v57, %v648_v56  ;;  %v660_v28 = vsel %vm655_vm13, %v648_v56, %v640_v57 }
 0x1ac   : > { %v670_v44 = vsel %vm668_vm0, %v660_v28, 0.0  ;;  %v671_v45 = vsel %vm669_vm1, %v656_v27, 0.0 }
 0x1b2   : > { %v650_v60 = vpop.permute.xlu0 %649  ;;  %v642_v62 = vpop.permute.xlu1 %641 }
 0x1b3   : > { %v657_v46 = vsel %vm655_vm13, %v642_v62, %v650_v60  ;;  %v661_v47 = vsel %vm655_vm13, %v650_v60, %v642_v62 }
 0x1b4   : > { %v672_v5 = vsel %vm668_vm0, %v661_v47, 0.0  ;;  %v673_v6 = vsel %vm669_vm1, %v657_v46, 0.0  ;;  %v783_v46 = vld [vmem:[%s2639_s4 + $0x10] sm:$0xff] }
 0x1ba   : > { %v652_v3 = vpop.permute.xlu1 %651 }
 0x1bb   : > { %v658_v20 = vsel %vm655_vm13, %v644_v58, %v652_v3  ;;  %v662_v22 = vsel %vm655_vm13, %v652_v3, %v644_v58 }
 0x1bc   : > { %v674_v29 = vsel %vm668_vm0, %v662_v22, 0.0  ;;  %v675_v30 = vsel %vm669_vm1, %v658_v20, 0.0 }
 0x1c2   : > { %v646_v63 = vpop.permute.xlu0 %645 }
 0x1c3   : > { %v659_v33 = vsel %vm655_vm13, %v646_v63, %v654_v61  ;;  %v663_v35 = vsel %vm655_vm13, %v654_v61, %v646_v63 }
 0x1c4   : > { %v676_v53 = vsel %vm668_vm0, %v663_v35, 0.0  ;;  %v677_v54 = vsel %vm669_vm1, %v659_v33, 0.0 }
 0x1da   : > { %v2229_v0 = vpop.permute.xlu2 %680 }
 0x1e2   : > { %v691_v12 = vpop.permute.xlu2 %690 }
 0x1ea   : > { %v687_v1 = vpop.permute.xlu0 %686  ;;  %v679_v13 = vpop.permute.xlu1 %678 }
 0x1eb   : > { %v695_v31 = vsel %vm694_vm12, %v679_v13, %v687_v1  ;;  %v699_v32 = vsel %vm694_vm12, %v687_v1, %v679_v13  ;;  %v728_v57 = vpop.permute.xlu2 %727 }
 0x1ec   : > { %v709_v49 = vsel %vm707_vm14, %v695_v31, 0.0  ;;  %v710_v50 = vsel %vm708_vm15, %v699_v32, 0.0  ;;  %v745_v2 = vadd.f32 %v728_v57, %v2207_v36  ;;  %v746_v4 = vadd.f32 %v728_v57, %v2209_v37 }
 0x1ed   : > { %v717_v62 = vadd.f32 %v709_v49, %v670_v44  ;;  %v718_v63 = vadd.f32 %v710_v50, %v671_v45  ;;  %v784_v45 = vld [vmem:[%s2639_s4 + $0x18] sm:$0xff] }
 0x1fa   : > { %v683_v11 = vpop.permute.xlu0 %682 }
 0x1fb   : > { %v697_v17 = vsel %vm694_vm12, %v683_v11, %v691_v12  ;;  %v701_v18 = vsel %vm694_vm12, %v691_v12, %v683_v11 }
 0x1fc   : > { %v713_v25 = vsel %vm707_vm14, %v697_v17, 0.0  ;;  %v714_v26 = vsel %vm708_vm15, %v701_v18, 0.0 }
 0x1fd   : > { %v721_v41 = vadd.f32 %v713_v25, %v674_v29  ;;  %v722_v42 = vadd.f32 %v714_v26, %v675_v30 }
 0x1ff   : > { %v757_v58 = vadd.f32 %v749_v14, %v721_v41  ;;  %v758_v59 = vadd.f32 %v750_v19, %v722_v42  ;;  %v753_v14 = vadd.f32 %v745_v2, %v717_v62  ;;  %v754_v19 = vadd.f32 %v746_v4, %v718_v63 }
 0x201   : > { %v765_v11 = vmax.f32 %v757_v58, 0.0  ;;  %v766_v12 = vmax.f32 %v758_v59, 0.0  ;;  %v761_v31 = vmax.f32 %v753_v14, 0.0  ;;  %v762_v32 = vmax.f32 %v754_v19, 0.0 }
 0x202   : > { %v693_v43 = vpop.permute.xlu0 %692 }
 0x203   : > { %v685_v48 = vpop.permute.xlu1 %684 }
 0x204   : > { %v698_v51 = vsel %vm694_vm12, %v685_v48, %v693_v43  ;;  %v702_v52 = vsel %vm694_vm12, %v693_v43, %v685_v48 }
 0x205   : > { %v715_v55 = vsel %vm707_vm14, %v698_v51, 0.0  ;;  %v716_v56 = vsel %vm708_vm15, %v702_v52, 0.0 }
 0x206   : > { %v723_v60 = vadd.f32 %v715_v55, %v676_v53  ;;  %v724_v61 = vadd.f32 %v716_v56, %v677_v54 }
 0x208   : > { %v759_v1 = vadd.f32 %v751_v23, %v723_v60  ;;  %v760_v3 = vadd.f32 %v752_v24, %v724_v61 }
 0x20a   : > { %v767_v13 = vmax.f32 %v759_v1, 0.0  ;;  %v768_v17 = vmax.f32 %v760_v3, 0.0  ;;  %v733_v18 = vpop.permute.xlu0 %732 }
 0x20b   : > { %v747_v20 = vadd.f32 %v733_v18, %v2211_v38  ;;  %v748_v22 = vadd.f32 %v733_v18, %v2213_v40  ;;  %v689_v23 = vpop.permute.xlu1 %688 }
 0x20c   : > { %v696_v24 = vsel %vm694_vm12, %v2229_v0, %v689_v23  ;;  %v700_v36 = vsel %vm694_vm12, %v689_v23, %v2229_v0  ;;  %v1725_v37 = vpack.i.bf16 %v768_v17, %v766_v12  ;;  %v1735_v25 = vpack.i.bf16 %v767_v13, %v765_v11 }
 0x20d   : > { %v711_v26 = vsel %vm707_vm14, %v696_v24, 0.0  ;;  %v712_v27 = vsel %vm708_vm15, %v700_v36, 0.0  ;;  %v855_v40 = vpack.c.bf16 %v767_v13, %v765_v11  ;;  %v856_v29 = vpack.c.bf16 %v768_v17, %v766_v12 }
 0x20e   : > { %v719_v38 = vadd.f32 %v711_v26, %v672_v5  ;;  %v720_v28 = vadd.f32 %v712_v27, %v673_v6  ;;  %1726 = vrot.lane.b32.xlu2 %v1725_v37, %s1915_s30  ;;  %1736 = vrot.lane.b32.xlu0 %v1735_v25, %s1916_s11 }
 0x20f   : > { %1716 = vrot.lane.b32.xlu1 %v1735_v25, %s1915_s30 }
 0x210   : > { %v755_v30 = vadd.f32 %v747_v20, %v719_v38  ;;  %v756_v0 = vadd.f32 %v748_v22, %v720_v28 }
 0x212   : > { %v763_v33 = vmax.f32 %v755_v30, 0.0  ;;  %v764_v35 = vmax.f32 %v756_v0, 0.0 }
 0x214   : > { %v1750_v41 = vpack.i.bf16 %v764_v35, %v762_v32  ;;  %v1720_v42 = vpack.i.bf16 %v763_v33, %v761_v31  ;;  %v853_v43 = vpack.c.bf16 %v763_v33, %v761_v31  ;;  %v854_v44 = vpack.c.bf16 %v764_v35, %v762_v32  ;;  %v1595_v32 = vld [vmem:[#allocation5] sm:$0xff]  ;;  %v1596_v33 = vld [vmem:[#allocation5 + $0x8] sm:$0xff]  ;;  %v1597_v35 = vld [vmem:[#allocation5 + $0x10] sm:$0xff] }
 0x216   : > { %1751 = vrot.lane.b32.xlu0 %v1750_v41, %s1916_s11  ;;  %1731 = vrot.lane.b32.xlu2 %v1750_v41, %s1915_s30  ;;  %v1598_v41 = vld [vmem:[#allocation5 + $0x18] sm:$0xff] }
 0x217   : > { %1721 = vrot.lane.b32.xlu1 %v1720_v42, %s1915_s30  ;;  %s1355_s30 = scalar_lea.hbm %s2645_s10, %s1601_s26 }
 0x21e   : > { %1076 = vperm.xlu0 %1714, %v784_v45   ;;  %1746 = vrot.lane.b32.xlu2 %v1720_v42, %s1916_s11 }
 0x21f   : > { %1741 = vrot.lane.b32.xlu1 %v1725_v37, %s1916_s11 }
 0x226   : > { %1071 = vperm.xlu2 %1713, %v783_v46  }
 0x268   : > { %v1727_v47 = vpop.permute.xlu2 %1726 }
 0x269   : > { %v1729_v49 = vunpack.i.h.bf16 %v1727_v47  ;;  %v1728_v50 = vunpack.i.l.bf16 %v1727_v47 }
 0x270   : > { %v1732_v59 = vpop.permute.xlu2 %1731 }
 0x271   : > { %v1734_v62 = vunpack.i.h.bf16 %v1732_v59  ;;  %v1733_v63 = vunpack.i.l.bf16 %v1732_v59 }
 0x278   : > { %v1747_v22 = vpop.permute.xlu2 %1746 }
 0x279   : > { %v1749_v25 = vunpack.i.h.bf16 %v1747_v22  ;;  %v1748_v26 = vunpack.i.l.bf16 %v1747_v22 }
 0x280   : > { %v1737_v60 = vpop.permute.xlu0 %1736 }
 0x281   : > { %v1717_v48 = vpop.permute.xlu1 %1716  ;;  %v1739_v19 = vunpack.i.h.bf16 %v1737_v60  ;;  %v1738_v20 = vunpack.i.l.bf16 %v1737_v60 }
 0x282   : > { %v1719_v51 = vunpack.i.h.bf16 %v1717_v48  ;;  %v1718_v52 = vunpack.i.l.bf16 %v1717_v48 }
 0x284   : > { %v835_v53 = vsel %vm477_vm2, %v1718_v52, %v1728_v50  ;;  %v836_v54 = vsel %vm477_vm2, %v1719_v51, %v1729_v49  ;;  %v839_v55 = vsel %vm477_vm2, %v1728_v50, %v1718_v52  ;;  %v840_v56 = vsel %vm477_vm2, %v1729_v49, %v1719_v51 }
 0x285   : > { %v1539_v57 = vpack.c.bf16 %v836_v54, %v835_v53  ;;  %v1557_v58 = vpack.c.bf16 %v840_v56, %v839_v55 }
 0x287   : > { %1540 = vmatpush.bf16.msk.msra.mxu2 %vm2106_vm4, %v1539_v57  ;;  %1558 = vmatpush.bf16.msk.msra.mxu3 %vm2118_vm5, %v1557_v58 }
 0x288   : > { %v1752_v17 = vpop.permute.xlu0 %1751 }
 0x289   : > { %v1722_v61 = vpop.permute.xlu1 %1721  ;;  %v1754_v23 = vunpack.i.h.bf16 %v1752_v17  ;;  %v1753_v24 = vunpack.i.l.bf16 %v1752_v17 }
 0x28a   : > { %v1724_v1 = vunpack.i.h.bf16 %v1722_v61  ;;  %v1723_v3 = vunpack.i.l.bf16 %v1722_v61 }
 0x28b   : > { %v805_v28 = vsel %vm437_vm6, %v1753_v24, %v1748_v26  ;;  %v802_v30 = vsel %vm437_vm6, %v1749_v25, %v1754_v23 }
 0x28c   : > { %v833_v5 = vsel %vm477_vm2, %v1723_v3, %v1733_v63  ;;  %v834_v6 = vsel %vm477_vm2, %v1724_v1, %v1734_v62  ;;  %v837_v2 = vsel %vm477_vm2, %v1733_v63, %v1723_v3  ;;  %v838_v4 = vsel %vm477_vm2, %v1734_v62, %v1724_v1  ;;  %v781_v1 = vld [vmem:[%s2639_s4] sm:$0xff] }
 0x28d   : > { %v1542_v11 = vpack.c.bf16 %v834_v6, %v833_v5  ;;  %v1560_v12 = vpack.c.bf16 %v838_v4, %v837_v2  ;;  %v782_v6 = vld [vmem:[%s2639_s4 + $0x8] sm:$0xff]  ;;  %v1072_v2 = vpop.permute.xlu2 %1071  ;;  %vm1123_vm2 = vcmp.eq.s32.totalorder %v2103_v21, 0 }
 0x28f   : > { %1543 = vmatpush.bf16.msk.msra.mxu2 %vm2106_vm4, %v1542_v11  ;;  %1561 = vmatpush.bf16.msk.msra.mxu3 %vm2118_vm5, %v1560_v12  ;;  %vm1188_vm4 = vcmask 64512   ;;  %vm1230_vm5 = vcmask 15360  }
 0x290   : > { %v1077_v17 = vpop.permute.xlu0 %1076 }
 0x291   : > { %v1742_v13 = vpop.permute.xlu1 %1741 }
 0x292   : > { %v1744_v18 = vunpack.i.h.bf16 %v1742_v13  ;;  %v1743_v14 = vunpack.i.l.bf16 %v1742_v13 }
 0x293   : > { %913 = vmatpush.bf16.msra.mxu2 %v855_v40  ;;  %952 = vmatpush.bf16.msra.mxu3 %v856_v29  ;;  %v806_v40 = vsel %vm437_vm6, %v1754_v23, %v1749_v25  ;;  %v801_v29 = vsel %vm437_vm6, %v1748_v26, %v1753_v24 }
 0x294   : > { %v807_v36 = vsel %vm437_vm6, %v1743_v14, %v1738_v20  ;;  %v808_v34 = vsel %vm437_vm6, %v1744_v18, %v1739_v19  ;;  %v803_v39 = vsel %vm437_vm6, %v1738_v20, %v1743_v14  ;;  %v804_v37 = vsel %vm437_vm6, %v1739_v19, %v1744_v18 }
 0x295   : > { %v1545_v27 = vpack.c.bf16 %v808_v34, %v807_v36  ;;  %v1563_v38 = vpack.c.bf16 %v804_v37, %v803_v39  ;;  %v1548_v0 = vpack.c.bf16 %v806_v40, %v805_v28  ;;  %v1566_v31 = vpack.c.bf16 %v802_v30, %v801_v29 }
 0x297   : > { %914 = vmatpush.bf16.msra.mxu2 %v853_v43  ;;  %953 = vmatpush.bf16.msra.mxu3 %v854_v44 }
 0x29b   : > { %1546 = vmatpush.bf16.msk.msra.mxu2 %vm2157_vm9, %v1545_v27  ;;  %1564 = vmatpush.bf16.msk.msra.mxu3 %vm2161_vm10, %v1563_v38 }
 0x29f   : > { %1549 = vmatpush.bf16.msk.msra.mxu2 %vm2157_vm9, %v1548_v0  ;;  %1567 = vmatpush.bf16.msk.msra.mxu3 %vm2161_vm10, %v1566_v31 }
 0x2a2   : > { %1550 = vmatmul.msk.bf16.vlgmr.msra.gmra.mxu2 %vm542_vm11, %v1595_v32  ;;  %1568 = vmatmul.msk.bf16.vlgmr.msra.gmra.mxu3 %vm542_vm11, %v1595_v32 }
 0x2b2   : > { %1551 = vmatmul.msk.bf16.gmra.mxu2 %vm542_vm11, %v1596_v33  ;;  %1569 = vmatmul.msk.bf16.gmra.mxu3 %vm542_vm11, %v1596_v33 }
 0x2c2   : > { %1552 = vmatmul.msk.bf16.gmra.mxu2 %vm542_vm11, %v1597_v35  ;;  %1570 = vmatmul.msk.bf16.gmra.mxu3 %vm542_vm11, %v1597_v35 }
 0x2d2   : > { %1553 = vmatmul.msk.bf16.gmra.mxu2 %vm542_vm11, %v1598_v41  ;;  %1571 = vmatmul.msk.bf16.gmra.mxu3 %vm542_vm11, %v1598_v41 }
 0x2e2   : > { %1554 = vmatmul.msk.bf16.gmra.mxu2 %vm542_vm11, %v1599_v7  ;;  %1572 = vmatmul.msk.bf16.gmra.mxu3 %vm542_vm11, %v1599_v7 }
 0x2f2   : > { %1555 = vmatmul.msk.bf16.gmra.mxu2 %vm542_vm11, %v1600_v8  ;;  %1573 = vmatmul.msk.bf16.gmra.mxu3 %vm542_vm11, %v1600_v8 }
 0x325   : > { %v918_v42 = vpop.f32.mrf.mxu2  ;;  %v957_v43 = vpop.f32.mrf.mxu3 }
 0x326   : > { %995 = vrot.lane.b32.xlu1 %v957_v43, %s1918_s27  ;;  %987 = vrot.lane.b32.xlu0 %v918_v42, %s1918_s27 }
 0x32d   : > { %v920_v44 = vpop.f32.mrf.mxu2  ;;  %v959_v45 = vpop.f32.mrf.mxu3 }
 0x32e   : > { %997 = vrot.lane.b32.xlu2 %v959_v45, %s1918_s27  ;;  %989 = vrot.lane.b32.xlu1 %v920_v44, %s1918_s27 }
 0x335   : > { %v923_v46 = vpop.f32.mrf.mxu2  ;;  %v962_v47 = vpop.f32.mrf.mxu3 }
 0x336   : > { %999 = vrot.lane.b32.xlu0 %v962_v47, %s1918_s27  ;;  %991 = vrot.lane.b32.xlu2 %v923_v46, %s1918_s27 }
 0x33d   : > { %v925_v48 = vpop.f32.mrf.mxu2  ;;  %v964_v49 = vpop.f32.mrf.mxu3 }
 0x33e   : > { %1001 = vrot.lane.b32.xlu2 %v964_v49, %s1918_s27  ;;  %993 = vrot.lane.b32.xlu1 %v925_v48, %s1918_s27  ;;  %s1358_s27 = sshll.u32 %s1355_s30, 4  ;;  %s1359_s27 = int_to_ptr.hbm [resolvable:$true] %s1358_s27 }
 0x33f   : > { %s1853_s18 = sshra.s32 %s1359_s27, 4  ;;  %s1854_s18 = int_to_ptr.hbm [resolvable:$true] %s1853_s18 }
 0x340   : > { %p1860_p3 = scmp.lt.s32.totalorder %s1854_s18, %s2645_s10 }
 0x345   : > { %v2401_v50 = vpop.f32.mrf.mxu2  ;;  %v2403_v51 = vpop.f32.mrf.mxu3 }
 0x34d   : > { %v2405_v52 = vpop.f32.mrf.mxu2  ;;  %v2407_v53 = vpop.f32.mrf.mxu3 }
 0x355   : > { %v933_v54 = vpop.f32.mrf.mxu2  ;;  %v972_v55 = vpop.f32.mrf.mxu3 }
 0x356   : > { %v1083_v29 = vadd.f32 %v1072_v2, %v933_v54  ;;  %v1084_v30 = vadd.f32 %v1072_v2, %v972_v55 }
 0x35d   : > { %v2409_v56 = vpop.f32.mrf.mxu2  ;;  %v2411_v57 = vpop.f32.mrf.mxu3 }
 0x365   : > { %v938_v58 = vpop.f32.mrf.mxu2  ;;  %v977_v59 = vpop.f32.mrf.mxu3 }
 0x366   : > { %1019 = vrot.lane.b32.xlu2 %v938_v58, %s1919_s28  ;;  %v1085_v58 = vadd.f32 %v1077_v17, %v2409_v56 }
 0x36d   : > { %v940_v60 = vpop.f32.mrf.mxu2  ;;  %v979_v61 = vpop.f32.mrf.mxu3 }
 0x36e   : > { %1029 = vrot.lane.b32.xlu1 %v979_v61, %s1919_s28  ;;  %1021 = vrot.lane.b32.xlu0 %v940_v60, %s1919_s28 }
 0x375   : > { %v943_v62 = vpop.f32.mrf.mxu2  ;;  %v982_v63 = vpop.f32.mrf.mxu3 }
 0x376   : > { %1031 = vrot.lane.b32.xlu2 %v982_v63, %s1919_s28  ;;  %1023 = vrot.lane.b32.xlu1 %v943_v62, %s1919_s28 }
 0x37d   : > { %v945_v3 = vpop.f32.mrf.mxu2  ;;  %v984_v5 = vpop.f32.mrf.mxu3 }
 0x37e   : > { %1061 = vperm.xlu2 %1713, %v781_v1   ;;  %1033 = vrot.lane.b32.xlu1 %v984_v5, %s1919_s28 }
 0x37f   : > { %1025 = vrot.lane.b32.xlu0 %v945_v3, %s1919_s28 }
 0x386   : > { %1066 = vperm.xlu1 %1712, %v782_v6  }
 0x387   : > { %1027 = vrot.lane.b32.xlu0 %v977_v59, %s1919_s28  ;;  %v1086_v59 = vadd.f32 %v1077_v17, %v2411_v57  ;;  %s384_s28 = sand.u32 1, %s1901_s14  }
 0x388   : > { %v998_v4 = vpop.permute.xlu2 %997  ;;  %s1451_s20 = sshll.u32 %s384_s28, 6  ;;  %s1344_s12 = scalar_lea.sflag [#allocation4], %s384_s28 }
 0x389   : > { %s2574_s21 = scalar_lea.vmem [#allocation7], %s1451_s20  ;;  %s1855_s20 = scalar_lea.hbm %s1854_s18, 64 }
 0x38a   : > { %s1356_s17 = sshll.u32 %s2574_s21, 4  ;;  %p1856_p0 = scmp.ne.s32.totalorder %s1854_s18, %s1855_s20  ;;  %s1357_s17 = int_to_ptr.vmem [resolvable:$true] %s1356_s17 }
 0x38b   : > { %p1861_p4 = scmp.lt.s32.totalorder %s1859_s25, %s1855_s20 }
 0x38c   : > { %p1857_p1 = pnand %p1856_p0, %p2014_p5 }
 0x38d   : > { %p1862_p7 = por %p1861_p4, %p1860_p3 }
 0x38e   : > { %p1858_p2 = pneg %p1857_p1 }
 0x390   : > { %v992_v12 = vpop.permute.xlu2 %991  ;;  %p1863_p8 = pnand %p1862_p7, %p1858_p2 }
 0x398   : > { %v996_v11 = vpop.permute.xlu1 %995  ;;  %v1002_v18 = vpop.permute.xlu2 %1001 }
 0x399   : > { %v988_v19 = vpop.permute.xlu0 %987 }
 0x39a   : > { %v1003_v56 = vsel %vm655_vm13, %v988_v19, %v996_v11  ;;  %v1007_v57 = vsel %vm655_vm13, %v996_v11, %v988_v19 }
 0x39b   : > { %v1011_v11 = vsel %vm668_vm0, %v1007_v57, 0.0  ;;  %v1012_v19 = vsel %vm669_vm1, %v1003_v56, 0.0  ;;  %v1162_v56 = vld [vmem:[%s2642_s7 + $0x10] sm:$0xff] }
 0x3a0   : > { %v990_v13 = vpop.permute.xlu1 %989 }
 0x3a1   : > { %v1004_v62 = vsel %vm655_vm13, %v990_v13, %v998_v4  ;;  %v1008_v63 = vsel %vm655_vm13, %v998_v4, %v990_v13 }
 0x3a2   : > { %v1013_v2 = vsel %vm668_vm0, %v1008_v63, 0.0  ;;  %v1014_v4 = vsel %vm669_vm1, %v1004_v62, 0.0  ;;  %v1160_v63 = vld [vmem:[%s2642_s7] sm:$0xff] }
 0x3a8   : > { %v1000_v23 = vpop.permute.xlu0 %999 }
 0x3a9   : > { %v1005_v24 = vsel %vm655_vm13, %v992_v12, %v1000_v23  ;;  %v1009_v36 = vsel %vm655_vm13, %v1000_v23, %v992_v12 }
 0x3aa   : > { %v1015_v27 = vsel %vm668_vm0, %v1009_v36, 0.0  ;;  %v1016_v38 = vsel %vm669_vm1, %v1005_v24, 0.0 }
 0x3b0   : > { %v994_v14 = vpop.permute.xlu1 %993 }
 0x3b1   : > { %v1006_v35 = vsel %vm655_vm13, %v994_v14, %v1002_v18  ;;  %v1010_v41 = vsel %vm655_vm13, %v1002_v18, %v994_v14 }
 0x3b2   : > { %v1017_v44 = vsel %vm668_vm0, %v1010_v41, 0.0  ;;  %v1018_v45 = vsel %vm669_vm1, %v1006_v35, 0.0 }
 0x3c0   : > { %v1020_v20 = vpop.permute.xlu2 %1019 }
 0x3d0   : > { %v1032_v34 = vpop.permute.xlu2 %1031 }
 0x3d8   : > { %v1062_v17 = vpop.permute.xlu2 %1061 }
 0x3d9   : > { %v1079_v16 = vadd.f32 %v1062_v17, %v2401_v50 }
 0x3e0   : > { %v1030_v22 = vpop.permute.xlu1 %1029  ;;  %v1022_v37 = vpop.permute.xlu0 %1021 }
 0x3e1   : > { %v1036_v48 = vsel %vm694_vm12, %v1022_v37, %v1030_v22  ;;  %v1040_v49 = vsel %vm694_vm12, %v1030_v22, %v1022_v37 }
 0x3e2   : > { %v1045_v1 = vsel %vm707_vm14, %v1036_v48, 0.0  ;;  %v1046_v3 = vsel %vm708_vm15, %v1040_v49, 0.0 }
 0x3e3   : > { %v1053_v18 = vadd.f32 %v1045_v1, %v1013_v2  ;;  %v1054_v14 = vadd.f32 %v1046_v3, %v1014_v4  ;;  %v1161_v1 = vld [vmem:[%s2642_s7 + $0x8] sm:$0xff]  ;;  %v1163_v3 = vld [vmem:[%s2642_s7 + $0x18] sm:$0xff] }
 0x3e8   : > { %v1024_v39 = vpop.permute.xlu1 %1023 }
 0x3e9   : > { %v1037_v25 = vsel %vm694_vm12, %v1024_v39, %v1032_v34  ;;  %v1041_v26 = vsel %vm694_vm12, %v1032_v34, %v1024_v39 }
 0x3ea   : > { %v1047_v28 = vsel %vm707_vm14, %v1037_v25, 0.0  ;;  %v1048_v40 = vsel %vm708_vm15, %v1041_v26, 0.0 }
 0x3eb   : > { %v1055_v0 = vadd.f32 %v1047_v28, %v1015_v27  ;;  %v1056_v31 = vadd.f32 %v1048_v40, %v1016_v38  ;;  %v1165_v28 = vld [vmem:[%s2643_s8 + $0x8] sm:$0xff]  ;;  %v1129_v40 = vld [vmem:[%s2641_s6] sm:$0xff] }
 0x3ed   : > { %v2443_v32 = vadd.f32 %v1083_v29, %v1055_v0  ;;  %v2445_v33 = vadd.f32 %v1084_v30, %v1056_v31  ;;  %v1167_v29 = vld [vmem:[%s2643_s8 + $0x18] sm:$0xff]  ;;  %v1166_v30 = vld [vmem:[%s2643_s8 + $0x10] sm:$0xff]  ;;  %v1164_v0 = vld [vmem:[%s2643_s8] sm:$0xff] }
 0x3ef   : > { %v1101_v7 = vadd.f32 %v2445_v33, %v2443_v32  ;;  %v1117_v8 = vmax.f32 %v2443_v32, %v2445_v33 }
 0x3f0   : > { %v1034_v42 = vpop.permute.xlu1 %1033 }
 0x3f1   : > { %v1026_v43 = vpop.permute.xlu0 %1025  ;;  %1102 = vadd.xlane.f32.xlu1 %v1101_v7  ;;  %1118 = vmax.xlane.f32.xlu0 %v1117_v8 }
 0x3f2   : > { %v1038_v46 = vsel %vm694_vm12, %v1026_v43, %v1034_v42  ;;  %v1042_v47 = vsel %vm694_vm12, %v1034_v42, %v1026_v43 }
 0x3f3   : > { %v1049_v54 = vsel %vm707_vm14, %v1038_v46, 0.0  ;;  %v1050_v55 = vsel %vm708_vm15, %v1042_v47, 0.0 }
 0x3f4   : > { %v1057_v60 = vadd.f32 %v1049_v54, %v1017_v44  ;;  %v1058_v61 = vadd.f32 %v1050_v55, %v1018_v45 }
 0x3f6   : > { %v2481_v5 = vadd.f32 %v1085_v58, %v1057_v60  ;;  %v2483_v6 = vadd.f32 %v1086_v59, %v1058_v61  ;;  %v1128_v58 = vld [vmem:[%s2640_s5] sm:$0xff] }
 0x3f8   : > { %v1067_v12 = vpop.permute.xlu1 %1066  ;;  %v1104_v13 = vadd.f32 %v2483_v6, %v2481_v5  ;;  %v1120_v50 = vmax.f32 %v2481_v5, %v2483_v6 }
 0x3f9   : > { %v1081_v22 = vadd.f32 %v1067_v12, %v2405_v52  ;;  %v1082_v23 = vadd.f32 %v1067_v12, %v2407_v53  ;;  %v1028_v24 = vpop.permute.xlu0 %1027  ;;  %v1080_v53 = vadd.f32 %v1062_v17, %v2403_v51 }
 0x3fa   : > { %v1035_v36 = vsel %vm694_vm12, %v1020_v20, %v1028_v24  ;;  %v1039_v34 = vsel %vm694_vm12, %v1028_v24, %v1020_v20  ;;  %1105 = vadd.xlane.f32.xlu0 %v1104_v13 }
 0x3fb   : > { %v2505_v39 = vadd.f32 %v1081_v22, %v1053_v18  ;;  %v2507_v37 = vadd.f32 %v1082_v23, %v1054_v14  ;;  %v1043_v52 = vsel %vm707_vm14, %v1035_v36, 0.0  ;;  %v1044_v15 = vsel %vm708_vm15, %v1039_v34, 0.0 }
 0x3fc   : > { %v1051_v25 = vadd.f32 %v1043_v52, %v1011_v11  ;;  %v1052_v26 = vadd.f32 %v1044_v15, %v1012_v19 }
 0x3fd   : > { %v1098_v20 = vadd.f32 %v2507_v37, %v2505_v39  ;;  %v1114_v51 = vmax.f32 %v2505_v39, %v2507_v37 }
 0x3fe   : > { %v2517_v27 = vadd.f32 %v1079_v16, %v1051_v25  ;;  %v2519_v38 = vadd.f32 %v1080_v53, %v1052_v26 }
 0x3ff   : > { %1099 = vadd.xlane.f32.xlu2 %v1098_v20 }
 0x400   : > { %v1111_v9 = vmax.f32 %v2517_v27, %v2519_v38  ;;  %v1095_v10 = vadd.f32 %v2519_v38, %v2517_v27 }
 0x402   : > { %1112 = vmax.xlane.f32.xlu0 %v1111_v9  ;;  %1096 = vadd.xlane.f32.xlu1 %v1095_v10 }
 0x407   : > { %1121 = vmax.xlane.f32.xlu2 %v1120_v50 }
 0x40f   : > { %1115 = vmax.xlane.f32.xlu2 %v1114_v51 }
 0x416   : > { %1175 = vperm.xlu0 %1714, %v1165_v28  }
 0x41b   : > { %1132 = vperm.xlu1 %1712, %v1129_v40  }
 0x41e   : > { %1185 = vperm.xlu0 %1714, %v1167_v29  }
 0x423   : > { %1180 = vperm.xlu1 %1712, %v1166_v30  }
 0x427   : > { %1170 = vperm.xlu2 %1713, %v1164_v0  }
 0x464   : > { %v1119_v31 = vpop.xlane.xlu0 %1118  ;;  %v1103_v41 = vpop.xlane.xlu1 %1102 }
 0x465   : > { %v1109_v8 = vmul.f32 0.00390625, %v1103_v41 }
 0x467   : > { %v1126_v45 = vsel %vm1123_vm2, %v1109_v8, %v1119_v31 }
 0x46d   : > { %v1106_v7 = vpop.xlane.xlu0 %1105 }
 0x46e   : > { %v1110_v42 = vmul.f32 0.00390625, %v1106_v7 }
 0x472   : > { %v1100_v35 = vpop.xlane.xlu2 %1099 }
 0x473   : > { %v1108_v47 = vmul.f32 0.00390625, %v1100_v35 }
 0x475   : > { %v1097_v46 = vpop.xlane.xlu1 %1096  ;;  %v1113_v55 = vpop.xlane.xlu0 %1112 }
 0x476   : > { %v1107_v48 = vmul.f32 0.00390625, %v1097_v46 }
 0x478   : > { %v1124_v59 = vsel %vm1123_vm2, %v1107_v48, %v1113_v55 }
 0x47a   : > { %v1122_v43 = vpop.xlane.xlu2 %1121 }
 0x47b   : > { %v1127_v44 = vsel %vm1123_vm2, %v1110_v42, %v1122_v43 }
 0x47c   : > { %1151 = vmatpush.msrb.mxu0 %v1127_v44 }
 0x47e   : > { %1152 = vmatpush.msrb.mxu0 %v1126_v45 }
 0x482   : > { %v1116_v49 = vpop.xlane.xlu2 %1115 }
 0x483   : > { %v1125_v54 = vsel %vm1123_vm2, %v1108_v47, %v1116_v49 }
 0x484   : > { %1153 = vmatpush.msrb.mxu0 %v1125_v54 }
 0x486   : > { %1154 = vmatpush.msrb.mxu0 %v1124_v59 }
 0x487   : > { %1574 = vmatmul.msk.f32.vlgmr.msrb.gmra.mxu0 %vm1135_vm3, %v1128_v58 }
 0x488   : > { %v1176_v57 = vpop.permute.xlu0 %1175 }
 0x48a   : > { %v1171_v2 = vpop.permute.xlu2 %1170 }
 0x48d   : > { %v1133_v21 = vpop.permute.xlu1 %1132 }
 0x490   : > { %v1186_v17 = vpop.permute.xlu0 %1185 }
 0x495   : > { %v1181_v19 = vpop.permute.xlu1 %1180 }
 0x504   : > { %v1156_v60 = vpop.f32.mrf.mxu0 }
 0x505   : > { %v1157_v61 = vadd.f32 %v1156_v60, %v1133_v21 }
 0x507   : > { %v1159_v62 = vmax.f32 %v1157_v61, 0.0 }
 0x509   : > { %1216 = vmatpush.msrb.mxu1 %v1159_v62  ;;  %1602 = vmatpush.msrb.mxu2 %v1159_v62 }
 0x50a   : > { %1603 = vmatpush.msrb.mxu3 %v1159_v62  ;;  %1575 = vmatmul.msk.f32.vlgmr.msrb.gmra.mxu1 %vm1188_vm4, %v1160_v63 }
 0x50b   : > { %1576 = vmatmul.msk.f32.vlgmr.msrb.gmra.mxu2 %vm1188_vm4, %v1161_v1  ;;  %1578 = vmatmul.msk.f32.vlgmr.msrb.gmra.mxu3 %vm1188_vm4, %v1163_v3 }
 0x513   : > { %1577 = vmatmul.msk.f32.gmra.mxu2 %vm1188_vm4, %v1162_v56  ;;  %v1771_v56 = vld [vmem:[%s2054_s29] sm:$0xff] }
 0x587   : > { %v1218_v4 = vpop.f32.mrf.mxu1 }
 0x588   : > { %v1219_v12 = vadd.f32 %v1218_v4, %v1171_v2  ;;  %v1772_v2 = vld [vmem:[%s2054_s29 + $0x8] sm:$0xff] }
 0x58a   : > { %v1231_v13 = vsel %vm1230_vm5, %v1219_v12, 0.0 }
 0x58b   : > { %1232 = vadd.xlane.f32.xlu2 %v1231_v13 }
 0x58e   : > { %v1221_v18 = vpop.f32.mrf.mxu2  ;;  %v1227_v14 = vpop.f32.mrf.mxu3 }
 0x58f   : > { %v1222_v22 = vadd.f32 %v1221_v18, %v1176_v57  ;;  %v1228_v23 = vadd.f32 %v1227_v14, %v1186_v17 }
 0x591   : > { %v1234_v24 = vsel %vm1230_vm5, %v1222_v22, 0.0  ;;  %v1240_v11 = vsel %vm1230_vm5, %v1228_v23, 0.0 }
 0x592   : > { %1235 = vadd.xlane.f32.xlu1 %v1234_v24 }
 0x593   : > { %1241 = vadd.xlane.f32.xlu2 %v1240_v11 }
 0x596   : > { %v1224_v36 = vpop.f32.mrf.mxu2 }
 0x597   : > { %v1225_v34 = vadd.f32 %v1224_v36, %v1181_v19 }
 0x599   : > { %v1237_v52 = vsel %vm1230_vm5, %v1225_v34, 0.0 }
 0x59a   : > { %1238 = vadd.xlane.f32.xlu0 %v1237_v52 }
 0x5fe   : > { %v1233_v15 = vpop.xlane.xlu2 %1232 }
 0x5ff   : > { %v1579_v16 = vmul.f32 -1.442695, %v1233_v15 }
 0x601   : > { %1755 = vpow2.f32 %v1579_v16 }
 0x605   : > { %v1236_v53 = vpop.xlane.xlu1 %1235 }
 0x606   : > { %v1580_v25 = vmul.f32 -1.442695, %v1236_v53  ;;  %v1242_v26 = vpop.xlane.xlu2 %1241 }
 0x607   : > { %v1756_v20 = vpop.eup %1755  ;;  %v1582_v9 = vmul.f32 -1.442695, %v1242_v26 }
 0x608   : > { %v1255_v10 = vadd.f32 1.0, %v1756_v20  ;;  %1757 = vpow2.f32 %v1580_v25  ;;  %v1773_v25 = vld [vmem:[%s2054_s29 + $0x10] sm:$0xff]  ;;  %v1774_v20 = vld [vmem:[%s2054_s29 + $0x18] sm:$0xff] }
 0x609   : > { %1759 = vpow2.f32 %v1582_v9 }
 0x60a   : > { %1761 = vrcp.f32 %v1255_v10  ;;  %v1270_v41 = vand.u32 2147483648, %v1255_v10  ;;  %v1268_v8 = vand.u32 2147483647, %v1255_v10  ;;  %vm1264_vm7 = vweird.f32 %v1255_v10 }
 0x60c   : > { %v1271_v47 = vor.u32 1.1754944e-38, %v1270_v41  ;;  %vm1269_vm9 = vcmp.eq.f32.partialorder %v1268_v8, 8.507059e+37 }
 0x60d   : > { %v1239_v50 = vpop.xlane.xlu0 %1238 }
 0x60e   : > { %v1758_v51 = vpop.eup %1757  ;;  %v1581_v28 = vmul.f32 -1.442695, %v1239_v50 }
 0x60f   : > { %v1760_v40 = vpop.eup %1759  ;;  %v1256_v29 = vadd.f32 1.0, %v1758_v51 }
 0x610   : > { %v1762_v30 = vpop.eup %1761  ;;  %v1258_v0 = vadd.f32 1.0, %v1760_v40  ;;  %1763 = vpow2.f32 %v1581_v28 }
 0x611   : > { %v1260_v31 = vmul.f32 %v1762_v30, %v1255_v10  ;;  %1765 = vrcp.f32 %v1256_v29  ;;  %vm1265_vm6 = vweird.f32 %v1762_v30  ;;  %v1283_v59 = vand.u32 2147483647, %v1256_v29 }
 0x612   : > { %1767 = vrcp.f32 %v1258_v0  ;;  %vm1266_vm8 = vmor %vm1264_vm7, %vm1265_vm6  ;;  %v1285_v61 = vand.u32 2147483648, %v1256_v29  ;;  %v1313_v1 = vand.u32 2147483647, %v1258_v0  ;;  %v1315_v3 = vand.u32 2147483648, %v1258_v0 }
 0x613   : > { %v1261_v35 = vsub.f32 1.0, %v1260_v31  ;;  %vm1279_vm12 = vweird.f32 %v1256_v29  ;;  %vm1309_vm14 = vweird.f32 %v1258_v0  ;;  %vm1284_vm15 = vcmp.eq.f32.partialorder %v1283_v59, 8.507059e+37 }
 0x614   : > { %v1316_v14 = vor.u32 1.1754944e-38, %v1315_v3  ;;  %vm1314_vm1 = vcmp.eq.f32.partialorder %v1313_v1, 8.507059e+37 }
 0x615   : > { %v1262_v7 = vmul.f32 %v1762_v30, %v1261_v35  ;;  %v1778_v35 = vld [vmem:[%s2054_s29 + $0x28] sm:$0xff] }
 0x616   : > { %v1764_v42 = vpop.eup %1763 }
 0x617   : > { %v1766_v43 = vpop.eup %1765  ;;  %v1263_v44 = vadd.f32 %v1762_v30, %v1262_v7  ;;  %v2565_v45 = vadd.f32 1.0, %v1764_v42 }
 0x618   : > { %v1768_v46 = vpop.eup %1767  ;;  %v1275_v48 = vmul.f32 %v1766_v43, %v1256_v29  ;;  %vm1280_vm10 = vweird.f32 %v1766_v43 }
 0x619   : > { %v1267_v49 = vsel %vm1266_vm8, %v1762_v30, %v1263_v44  ;;  %v1305_v54 = vmul.f32 %v1768_v46, %v1258_v0  ;;  %1769 = vrcp.f32 %v2565_v45  ;;  %vm1310_vm11 = vweird.f32 %v1768_v46  ;;  %vm1281_vm13 = vmor %vm1279_vm12, %vm1280_vm10  ;;  %v1777_v0 = vld [vmem:[%s2054_s29 + $0x20] sm:$0xff] }
 0x61a   : > { %v1272_v55 = vsel %vm1269_vm9, %v1271_v47, %v1267_v49  ;;  %v1276_v58 = vsub.f32 1.0, %v1275_v48  ;;  %vm1311_vm0 = vmor %vm1309_vm14, %vm1310_vm11  ;;  %v1298_v16 = vand.u32 2147483647, %v2565_v45  ;;  %v1300_v53 = vand.u32 2147483648, %v2565_v45 }
 0x61b   : > { %v1319_v21 = vmul.f32 %v1272_v55, %v2517_v27  ;;  %v1320_v60 = vmul.f32 %v1272_v55, %v2519_v38  ;;  %v1306_v62 = vsub.f32 1.0, %v1305_v54  ;;  %v1286_v27 = vor.u32 1.1754944e-38, %v1285_v61 }
 0x61c   : > { %v1277_v63 = vmul.f32 %v1766_v43, %v1276_v58  ;;  %vm1294_vm3 = vweird.f32 %v2565_v45  ;;  %v1301_v51 = vor.u32 1.1754944e-38, %v1300_v53  ;;  %vm1299_vm5 = vcmp.eq.f32.partialorder %v1298_v16, 8.507059e+37 }
 0x61d   : > { %v1327_v57 = vadd.f32 %v1771_v56, %v1319_v21  ;;  %v1328_v4 = vadd.f32 %v1772_v2, %v1320_v60  ;;  %v1307_v12 = vmul.f32 %v1768_v46, %v1306_v62 }
 0x61e   : > { %v1278_v13 = vadd.f32 %v1766_v43, %v1277_v63 }
 0x61f   : > { %v1770_v17 = vpop.eup %1769  ;;  %1335 = vst [vmem:[%s2574_s21] sm:$0xff] %v1327_v57  ;;  %v1308_v38 = vadd.f32 %v1768_v46, %v1307_v12 }
 0x620   : > { %1336 = vst [vmem:[%s2574_s21 + $0x8] sm:$0xff] %v1328_v4  ;;  %v1282_v18 = vsel %vm1281_vm13, %v1766_v43, %v1278_v13  ;;  %v1290_v22 = vmul.f32 %v1770_v17, %v2565_v45  ;;  %vm1295_vm2 = vweird.f32 %v1770_v17 }
 0x621   : > { %v1287_v23 = vsel %vm1284_vm15, %v1286_v27, %v1282_v18  ;;  %v1312_v24 = vsel %vm1311_vm0, %v1768_v46, %v1308_v38  ;;  %vm1296_vm4 = vmor %vm1294_vm3, %vm1295_vm2 }
 0x622   : > { %v1321_v11 = vmul.f32 %v1287_v23, %v2505_v39  ;;  %v1322_v19 = vmul.f32 %v1287_v23, %v2507_v37  ;;  %v1317_v36 = vsel %vm1314_vm1, %v1316_v14, %v1312_v24  ;;  %v1291_v34 = vsub.f32 1.0, %v1290_v22  ;;  %v1775_v37 = vld [vmem:[%s2054_s29 + $0x30] sm:$0xff] }
 0x623   : > { %v1325_v52 = vmul.f32 %v1317_v36, %v2481_v5  ;;  %v1326_v15 = vmul.f32 %v1317_v36, %v2483_v6  ;;  %v1776_v5 = vld [vmem:[%s2054_s29 + $0x38] sm:$0xff] }
 0x624   : > { %v1329_v26 = vadd.f32 %v1773_v25, %v1321_v11  ;;  %v1330_v39 = vadd.f32 %v1774_v20, %v1322_v19  ;;  %v1292_v9 = vmul.f32 %v1770_v17, %v1291_v34 }
 0x625   : > { %v1333_v10 = vadd.f32 %v1775_v37, %v1325_v52  ;;  %v1334_v50 = vadd.f32 %v1776_v5, %v1326_v15 }
 0x626   : > { %1337 = vst [vmem:[%s2574_s21 + $0x10] sm:$0xff] %v1329_v26  ;;  %v1293_v6 = vadd.f32 %v1770_v17, %v1292_v9 }
 0x627   : > { %1338 = vst [vmem:[%s2574_s21 + $0x18] sm:$0xff] %v1330_v39 }
 0x628   : > { %1341 = vst [vmem:[%s2574_s21 + $0x30] sm:$0xff] %v1333_v10  ;;  %v1297_v28 = vsel %vm1296_vm4, %v1770_v17, %v1293_v6 }
 0x629   : > { %1342 = vst [vmem:[%s2574_s21 + $0x38] sm:$0xff] %v1334_v50  ;;  %v1302_v40 = vsel %vm1299_vm5, %v1301_v51, %v1297_v28 }
 0x62a   : > { %v1323_v29 = vmul.f32 %v1302_v40, %v2443_v32  ;;  %v1324_v30 = vmul.f32 %v1302_v40, %v2445_v33 }
 0x62c   : > { %v1331_v31 = vadd.f32 %v1777_v0, %v1323_v29  ;;  %v1332_v41 = vadd.f32 %v1778_v35, %v1324_v30 }
 0x62e   : > { %1339 = vst [vmem:[%s2574_s21 + $0x20] sm:$0xff] %v1331_v31 }
 0x62f   : > { %1340 = vst [vmem:[%s2574_s21 + $0x28] sm:$0xff] %v1332_v41 }
 0x630   : > { %1866 = shalt.err (!%p1863_p8)
}
 0x631   : > { %s1920_s28 = smov 256  }
 0x632   : > { %1612 = dma.vmem_to_hbm [thread:$0]  (%p2014_p5), %s1357_s17, 1024, %s1359_s27, %s1344_s12, %s1920_s28, %s1920_s28, %s1916_s11  }
 0x633 PF: > { %p1629_p9 = scmp.ge.s32.totalorder %s1909_s16, 2  ;;  %s1373_s21 = sand.u32 1, %s1897_s13  }
 0x634   : > { %s1374_s26 = scalar_lea.sflag [#allocation4], %s1373_s21 }
 0x635   : > { %p1622_p10 = pnand %p1629_p9, %p2018_p6 }
 0x637   : > { %p1623_p11 = pneg %p1622_p10 }
 0x639   : > { %1892 = dma.done.wait (%p1623_p11), %s1374_s26, 1024  }
 0x63a   : > { %1894 = vsyncadd (%p1623_p11), %s1374_s26, 4294966272  ;;  %s2658_s18 = sld [smem:[#allocation11_spill]]  ;;  %p22_p12 = scmp.ge.s32.totalorder %s2001_s19, 4  }
 0x63b   : > { %s2659_s13 = smov %s1901_s14  ;;  %s2660_s14 = smov %s1905_s15 }
 0x63c   : > { %s2662_s16 = smov %s2001_s19  ;;  %24 = sbr.rel (!%p22_p12) target bundleno = 5 (0x5), region = 104 }
 0x640   : > { %s2661_s15 = smov %s2658_s18 }
 0x641   :  { %1380 = vsyncpa [#allocation3], 1 }
 0x642   :  { %1382 = vsyncpa [#allocation3 + $0x1], 1 }
 0x643   :  { %1383 = vsyncpa [#allocation6], 1 }
 0x644   :  { %1384 = vsyncpa [#allocation4], 1 }
 0x645   :  { %1386 = vsyncpa [#allocation4 + $0x1], 1 }

</bundles_post_ra>
